<compile_context>
chip_gen: v7x
topology: tpu7x:2x2x1
jax: 0.10.0
libtpu: 0.0.40
codegen_flags: <defaults>
</compile_context>

<pallas_src>
import functools
import math

import jax
import jax.numpy as jnp
from jax.experimental import pallas as pl
from jax.experimental.pallas import tpu as pltpu

NOISE_STD = 1e-5
_LOGISTIC_SCALE = 0.5513288954217921  # sqrt(3)/pi -> logistic(0, s) has unit variance


def _bits_to_uniform(bits):
    """Random integer bits (int32/uint32) -> float32 uniform in [0, 1)."""
    mant = jax.lax.shift_right_logical(bits, jnp.array(9, bits.dtype))
    fbits = jax.lax.bitwise_or(mant, jnp.array(0x3F800000, bits.dtype))
    return jax.lax.bitcast_convert_type(fbits, jnp.float32) - 1.0


def _uniform_to_normal(u):
    """Zero-mean, unit-variance draw from U(0,1) via the logistic inverse CDF."""
    u = jnp.clip(u, 1e-6, 1.0 - 1e-6)
    return _LOGISTIC_SCALE * jnp.log(u / (1.0 - u))


def _hash_u32(x):
    """murmur3-style finalizer; decorrelates sequential counters."""
    x = x ^ jax.lax.shift_right_logical(x, jnp.uint32(16))
    x = x * jnp.uint32(0x7FEB352D)
    x = x ^ jax.lax.shift_right_logical(x, jnp.uint32(15))
    x = x * jnp.uint32(0x846CA68B)
    x = x ^ jax.lax.shift_right_logical(x, jnp.uint32(16))
    return x


def _normal_noise_tpu(shape, seed, block_idx):
    """N(0,1) samples from the TPU hardware PRNG (Mosaic lowering only)."""
    pltpu.prng_seed(seed + block_idx)
    if hasattr(pltpu, "stateful_normal"):
        return pltpu.stateful_normal(shape, jnp.float32)
    bits = pltpu.prng_random_bits(shape)
    return _uniform_to_normal(_bits_to_uniform(bits))


def _normal_noise_portable(shape, seed, block_idx):
    """Counter-based hash PRNG built from plain lax ops (runs on any backend)."""
    bb, t_len, f_dim = shape
    bi = jax.lax.broadcasted_iota(jnp.int32, shape, 0)
    ti = jax.lax.broadcasted_iota(jnp.int32, shape, 1)
    fi = jax.lax.broadcasted_iota(jnp.int32, shape, 2)
    ctr = fi + f_dim * (ti + t_len * (bi + bb * block_idx))   # globally unique
    ctr = jax.lax.bitcast_convert_type(ctr, jnp.uint32)
    mix = jax.lax.bitcast_convert_type(seed, jnp.uint32) * jnp.uint32(0x9E3779B1)
    bits = _hash_u32(ctr ^ mix)
    return _uniform_to_normal(_bits_to_uniform(bits))


def _swp_kernel(seed_ref, x_ref, w_ref, out_ref, *, use_tpu_prng):
    # seed_ref: (1,) int32 in SMEM (scalar prefetch)
    # x_ref:    (Bb, T, F) input block
    # w_ref:    (1, F)     mm_weights (num_head == 1)
    # out_ref:  (Bb, 2F)   [avg_repr | std_repr]
    x = x_ref[...].astype(jnp.float32)                        # (Bb, T, F)
    w = w_ref[...].astype(jnp.float32)                        # (1, F)
    bb, t_len, f_dim = x.shape

    # scores = inputs @ mm_weights^T -> (Bb, T, 1); F-contraction on the MXU.
    scores = jax.lax.dot_general(
        x.reshape(bb * t_len, f_dim), w,
        dimension_numbers=(((1,), (1,)), ((), ())),
        preferred_element_type=jnp.float32,
    ).reshape(bb, t_len, 1)

    # attentions = softmax(tanh(scores), axis=T)
    s = jnp.tanh(scores)
    s = s - jnp.max(s, axis=1, keepdims=True)                 # (Bb, T, 1)
    e = jnp.exp(s)
    att = e / jnp.sum(e, axis=1, keepdims=True)               # (Bb, T, 1)

    # weighted = inputs * attentions; avg_repr = weighted.sum(T)
    weighted = x * att                                        # (Bb, T, F)
    avg = jnp.sum(weighted, axis=1)                           # (Bb, F)

    # std_repr = (weighted + noise).std(T), unbiased (ddof=1) like torch.
    seed = seed_ref[0]
    blk = pl.program_id(0)
    if use_tpu_prng:
        z = _normal_noise_tpu(weighted.shape, seed, blk)
    else:
        z = _normal_noise_portable(weighted.shape, seed, blk)
    noisy = weighted + NOISE_STD * z

    mu = jnp.mean(noisy, axis=1, keepdims=True)               # (Bb, 1, F)
    inv_ddof = (1.0 / (t_len - 1)) if t_len > 1 else float("nan")  # torch: NaN at T==1
    var = jnp.sum(jnp.square(noisy - mu), axis=1) * inv_ddof       # (Bb, F)
    std = jnp.sqrt(var)

    # Two lane-aligned column slabs of the single (Bb, 2F) output.
    out_ref[:, :f_dim] = avg.astype(out_ref.dtype)
    out_ref[:, f_dim:] = std.astype(out_ref.dtype)


def _pick_block_b(batch, t_len, f_dim, itemsize, vmem_budget=4 << 20):
    """Largest multiple-of-8 batch block within budget; keep >=2 grid steps when possible."""
    bb = vmem_budget // max(1, t_len * f_dim * itemsize)
    bb = max(8, (bb // 8) * 8)
    bb = min(bb, max(8, ((batch + 1) // 2 + 7) // 8 * 8))
    return min(batch, bb)


def self_weighted_pooling(inputs, mm_weights, seed, block_b=None):
    """inputs: (B, T, F); mm_weights: (1, F); seed: (1,) int32 -> (B, 2F)."""
    B, T, F = inputs.shape
    if mm_weights.shape[0] != 1:
        raise NotImplementedError("num_head > 1 branch not translated")

    itemsize = jnp.dtype(inputs.dtype).itemsize
    if block_b is None:
        block_b = _pick_block_b(B, T, F, itemsize)
    grid_b = pl.cdiv(B, block_b)
    # Partial last batch blocks are safe: every reduction is per batch row (over
    # T only), so padded rows never contaminate valid rows.

    in_block_bytes = block_b * T * F * itemsize
    vmem_limit = int(min(max(10 * in_block_bytes + (8 << 20), 16 << 20), 48 << 20))

    use_tpu_prng = jax.default_backend() == "tpu"
    kernel = functools.partial(_swp_kernel, use_tpu_prng=use_tpu_prng)

    return pl.pallas_call(
        kernel,
        out_shape=jax.ShapeDtypeStruct((B, 2 * F), inputs.dtype),
        grid_spec=pltpu.PrefetchScalarGridSpec(
            num_scalar_prefetch=1,                      # seed -> SMEM
            grid=(grid_b,),
            in_specs=[
                pl.BlockSpec((block_b, T, F), lambda b, s_ref: (b, 0, 0)),
                pl.BlockSpec((1, F), lambda b, s_ref: (0, 0)),
            ],
            out_specs=pl.BlockSpec((block_b, 2 * F), lambda b, s_ref: (b, 0)),
        ),
        compiler_params=pltpu.CompilerParams(
            dimension_semantics=("parallel",),
            vmem_limit_bytes=vmem_limit,
        ),
    )(seed, inputs, mm_weights)


if __name__ == "__main__":
    B, T, F = 16, 16, 128
    num_head = 1

    key = jax.random.PRNGKey(0)
    k_x, k_w = jax.random.split(key, 2)

    inputs = jax.random.normal(k_x, (B, T, F), dtype=jnp.float32)

    # kaiming_uniform_-like init (gain=sqrt(2), fan_in=feature_dim)
    bound = math.sqrt(6.0 / F)
    mm_weights = jax.random.uniform(
        k_w, (num_head, F), minval=-bound, maxval=bound, dtype=jnp.float32
    )
    seed = jnp.array([1234], dtype=jnp.int32)

    out = self_weighted_pooling(inputs, mm_weights, seed)
    out = jax.block_until_ready(out)

    # Pure-JAX reference of the PyTorch forward. The in-kernel noise has std 1e-5,
    # far below the comparison tolerance, so the reference std omits it.
    scores = jnp.einsum("btf,hf->bth", inputs, mm_weights)
    att = jax.nn.softmax(jnp.tanh(scores), axis=1)
    weighted = inputs * att
    ref_avg = weighted.sum(axis=1)
    ref_std = jnp.std(weighted, axis=1, ddof=1)

    assert out.shape == (B, 2 * F)
    assert bool(jnp.allclose(out[:, :F], ref_avg, rtol=5e-3, atol=5e-3))
    assert bool(jnp.allclose(out[:, F:], ref_std, rtol=5e-3, atol=5e-3))

    print("KERNEL_OK")
</pallas_src>

<mosaic_0001>
module attributes {stable_mosaic.version = 11 : i64} {
  func.func @_swp_kernel(%arg0: i32, %arg1: memref<1xi32, #tpu.memory_space<smem>>, %arg2: memref<8x16x128xf32, #tpu.memory_space<vmem>>, %arg3: memref<1x128xf32, #tpu.memory_space<vmem>>, %arg4: memref<8x256xf32, #tpu.memory_space<vmem>>) attributes {dimension_semantics = [#tpu.dimension_semantics<parallel>], iteration_bounds = array<i64: 2>, scalar_prefetch = 1 : i64, scratch_operands = 0 : i64, tpu.core_type = #tpu.core_type<tc>, window_params = [{transform_indices = @transform_0, window_bounds = array<i64: 8, 16, 128>}, {pipeline_mode = #tpu.pipeline_mode<synchronous>, transform_indices = @transform_1, window_bounds = array<i64: 1, 128>}, {transform_indices = @transform_2, window_bounds = array<i64: 8, 256>}]} {
    %c0 = arith.constant 0 : index
    %c0_0 = arith.constant 0 : index
    %c0_1 = arith.constant 0 : index
    %0 = vector.load %arg2[%c0, %c0_0, %c0_1] : memref<8x16x128xf32, #tpu.memory_space<vmem>>, vector<8x16x128xf32>
    %c0_2 = arith.constant 0 : index
    %c0_3 = arith.constant 0 : index
    %1 = vector.load %arg3[%c0_2, %c0_3] : memref<1x128xf32, #tpu.memory_space<vmem>>, vector<1x128xf32>
    %2 = vector.shape_cast %0 : vector<8x16x128xf32> to vector<128x128xf32>
    %cst = arith.constant dense<0.000000e+00> : vector<128x1xf32>
    %3 = tpu.matmul %2, %1, %cst {dimension_numbers = #tpu.dot_dimension_numbers<[1], [1], [0], [0], [0, 0, 1, 0], [], []>} : vector<128x128xf32>, vector<1x128xf32>, vector<128x1xf32> -> vector<128x1xf32>
    %4 = vector.shape_cast %3 : vector<128x1xf32> to vector<8x16x1xf32>
    %5 = math.tanh %4 : vector<8x16x1xf32>
    %cst_4 = arith.constant dense<0xFF800000> : vector<8x1xf32>
    %6 = vector.multi_reduction <maximumf>, %5, %cst_4 [1] : vector<8x16x1xf32> to vector<8x1xf32>
    %7 = vector.shape_cast %6 : vector<8x1xf32> to vector<8x1x1xf32>
    %8 = vector.broadcast %7 : vector<8x1x1xf32> to vector<8x16x1xf32>
    %9 = arith.subf %5, %8 : vector<8x16x1xf32>
    %10 = math.exp %9 : vector<8x16x1xf32>
    %cst_5 = arith.constant dense<0.000000e+00> : vector<8x1xf32>
    %11 = vector.multi_reduction <add>, %10, %cst_5 [1] : vector<8x16x1xf32> to vector<8x1xf32>
    %12 = vector.shape_cast %11 : vector<8x1xf32> to vector<8x1x1xf32>
    %13 = vector.broadcast %12 : vector<8x1x1xf32> to vector<8x16x1xf32>
    %14 = arith.divf %10, %13 : vector<8x16x1xf32>
    %15 = vector.broadcast %14 : vector<8x16x1xf32> to vector<8x16x128xf32>
    %16 = arith.mulf %0, %15 : vector<8x16x128xf32>
    %cst_6 = arith.constant dense<0.000000e+00> : vector<8x128xf32>
    %17 = vector.multi_reduction <add>, %16, %cst_6 [1] : vector<8x16x128xf32> to vector<8x128xf32>
    %c0_7 = arith.constant 0 : index
    %18 = memref.load %arg1[%c0_7] : memref<1xi32, #tpu.memory_space<smem>>
    %19 = tpu.iota {dimensions = array<i32: 0>} : vector<8x16x128xi32>
    %20 = tpu.iota {dimensions = array<i32: 1>} : vector<8x16x128xi32>
    %21 = tpu.iota {dimensions = array<i32: 2>} : vector<8x16x128xi32>
    %c8_i32 = arith.constant 8 : i32
    %22 = arith.muli %c8_i32, %arg0 : i32
    %23 = vector.broadcast %22 : i32 to vector<8x16x128xi32>
    %24 = arith.addi %19, %23 : vector<8x16x128xi32>
    %c16_i32 = arith.constant 16 : i32
    %25 = vector.broadcast %c16_i32 : i32 to vector<8x16x128xi32>
    %26 = arith.muli %25, %24 : vector<8x16x128xi32>
    %27 = arith.addi %20, %26 : vector<8x16x128xi32>
    %c128_i32 = arith.constant 128 : i32
    %28 = vector.broadcast %c128_i32 : i32 to vector<8x16x128xi32>
    %29 = arith.muli %28, %27 : vector<8x16x128xi32>
    %30 = arith.addi %21, %29 : vector<8x16x128xi32>
    %31 = tpu.bitcast %30 : vector<8x16x128xi32> -> vector<8x16x128xi32>
    %32 = arith.bitcast %18 : i32 to i32
    %c-1640531535_i32 = arith.constant -1640531535 : i32
    %33 = arith.muli %32, %c-1640531535_i32 : i32
    %34 = vector.broadcast %33 : i32 to vector<8x16x128xi32>
    %35 = arith.xori %31, %34 : vector<8x16x128xi32>
    %c16_i32_8 = arith.constant 16 : i32
    %36 = vector.broadcast %c16_i32_8 : i32 to vector<8x16x128xi32>
    %37 = arith.shrui %35, %36 : vector<8x16x128xi32>
    %38 = arith.xori %35, %37 : vector<8x16x128xi32>
    %c2146121005_i32 = arith.constant 2146121005 : i32
    %39 = vector.broadcast %c2146121005_i32 : i32 to vector<8x16x128xi32>
    %40 = arith.muli %38, %39 : vector<8x16x128xi32>
    %c15_i32 = arith.constant 15 : i32
    %41 = vector.broadcast %c15_i32 : i32 to vector<8x16x128xi32>
    %42 = arith.shrui %40, %41 : vector<8x16x128xi32>
    %43 = arith.xori %40, %42 : vector<8x16x128xi32>
    %c-2073254261_i32 = arith.constant -2073254261 : i32
    %44 = vector.broadcast %c-2073254261_i32 : i32 to vector<8x16x128xi32>
    %45 = arith.muli %43, %44 : vector<8x16x128xi32>
    %c16_i32_9 = arith.constant 16 : i32
    %46 = vector.broadcast %c16_i32_9 : i32 to vector<8x16x128xi32>
    %47 = arith.shrui %45, %46 : vector<8x16x128xi32>
    %48 = arith.xori %45, %47 : vector<8x16x128xi32>
    %c9_i32 = arith.constant 9 : i32
    %49 = vector.broadcast %c9_i32 : i32 to vector<8x16x128xi32>
    %50 = arith.shrui %48, %49 : vector<8x16x128xi32>
    %c1065353216_i32 = arith.constant 1065353216 : i32
    %51 = vector.broadcast %c1065353216_i32 : i32 to vector<8x16x128xi32>
    %52 = arith.ori %50, %51 : vector<8x16x128xi32>
    %53 = tpu.bitcast %52 : vector<8x16x128xi32> -> vector<8x16x128xf32>
    %cst_10 = arith.constant 1.000000e+00 : f32
    %54 = vector.broadcast %cst_10 : f32 to vector<8x16x128xf32>
    %55 = arith.subf %53, %54 : vector<8x16x128xf32>
    %cst_11 = arith.constant 9.99999997E-7 : f32
    %cst_12 = arith.constant 0.999998986 : f32
    %56 = vector.broadcast %cst_11 : f32 to vector<8x16x128xf32>
    %57 = arith.maximumf %56, %55 : vector<8x16x128xf32>
    %58 = vector.broadcast %cst_12 : f32 to vector<8x16x128xf32>
    %59 = arith.minimumf %58, %57 : vector<8x16x128xf32>
    %cst_13 = arith.constant 1.000000e+00 : f32
    %60 = vector.broadcast %cst_13 : f32 to vector<8x16x128xf32>
    %61 = arith.subf %60, %59 : vector<8x16x128xf32>
    %62 = arith.divf %59, %61 : vector<8x16x128xf32>
    %63 = math.log %62 : vector<8x16x128xf32>
    %cst_14 = arith.constant 0.551328897 : f32
    %64 = vector.broadcast %cst_14 : f32 to vector<8x16x128xf32>
    %65 = arith.mulf %64, %63 : vector<8x16x128xf32>
    %cst_15 = arith.constant 9.99999974E-6 : f32
    %66 = vector.broadcast %cst_15 : f32 to vector<8x16x128xf32>
    %67 = arith.mulf %66, %65 : vector<8x16x128xf32>
    %68 = arith.addf %16, %67 : vector<8x16x128xf32>
    %cst_16 = arith.constant dense<0.000000e+00> : vector<8x128xf32>
    %69 = vector.multi_reduction <add>, %68, %cst_16 [1] : vector<8x16x128xf32> to vector<8x128xf32>
    %70 = vector.shape_cast %69 : vector<8x128xf32> to vector<8x1x128xf32>
    %cst_17 = arith.constant 1.600000e+01 : f32
    %71 = vector.broadcast %cst_17 : f32 to vector<8x1x128xf32>
    %72 = arith.divf %70, %71 : vector<8x1x128xf32>
    %73 = vector.broadcast %72 : vector<8x1x128xf32> to vector<8x16x128xf32>
    %74 = arith.subf %68, %73 : vector<8x16x128xf32>
    %75 = arith.mulf %74, %74 : vector<8x16x128xf32>
    %cst_18 = arith.constant dense<0.000000e+00> : vector<8x128xf32>
    %76 = vector.multi_reduction <add>, %75, %cst_18 [1] : vector<8x16x128xf32> to vector<8x128xf32>
    %cst_19 = arith.constant 0.0666666701 : f32
    %77 = vector.broadcast %cst_19 : f32 to vector<8x128xf32>
    %78 = arith.mulf %76, %77 : vector<8x128xf32>
    %79 = math.sqrt %78 : vector<8x128xf32>
    %c0_20 = arith.constant 0 : index
    %c0_21 = arith.constant 0 : index
    %80 = vector.load %arg4[%c0_20, %c0_21] : memref<8x256xf32, #tpu.memory_space<vmem>>, vector<8x128xf32>
    tpu.vector_store %arg4[%c0_20, %c0_21], %17 {strides = array<i32>} : memref<8x256xf32, #tpu.memory_space<vmem>>, vector<8x128xf32>,
    %c0_22 = arith.constant 0 : index
    %c128 = arith.constant 128 : index
    %81 = vector.load %arg4[%c0_22, %c128] : memref<8x256xf32, #tpu.memory_space<vmem>>, vector<8x128xf32>
    tpu.vector_store %arg4[%c0_22, %c128], %79 {strides = array<i32>} : memref<8x256xf32, #tpu.memory_space<vmem>>, vector<8x128xf32>,
    return
  }
  func.func @transform_0(%arg0: i32, %arg1: memref<1xi32, #tpu.memory_space<smem>>) -> (i32, i32, i32) {
    %c0_i32 = arith.constant 0 : i32
    %c0_i32_0 = arith.constant 0 : i32
    %c0_i32_1 = arith.constant 0 : i32
    return %arg0, %c0_i32, %c0_i32_0 : i32, i32, i32
  }
  func.func @transform_1(%arg0: i32, %arg1: memref<1xi32, #tpu.memory_space<smem>>) -> (i32, i32) {
    %c0_i32 = arith.constant 0 : i32
    %c0_i32_0 = arith.constant 0 : i32
    %c0_i32_1 = arith.constant 0 : i32
    return %c0_i32, %c0_i32_0 : i32, i32
  }
  func.func @transform_2(%arg0: i32, %arg1: memref<1xi32, #tpu.memory_space<smem>>) -> (i32, i32) {
    %c0_i32 = arith.constant 0 : i32
    %c0_i32_0 = arith.constant 0 : i32
    return %arg0, %c0_i32 : i32, i32
  }
}

</mosaic_0001>

<bundles_post_ra>
// kernel: tpu_custom_call.1
= control target key start
LH: loop header
LB: loop body
LE: loop exit
PB: predicated region body
PF: predicated region fallthrough
CT: control target
= control target key end

     0   :  { %s2384_s0 = inlined_call_operand.<no memory space> [shape: s32[1], index: 0, kind: input, shape index: {}]   ;;  %s2385_s1 = inlined_call_operand.hbm [shape: f32[16,16,128], index: 1, kind: input, shape index: {}]   ;;  %s2386_s2 = inlined_call_operand.vmem [shape: f32[1,128], index: 2, kind: input, shape index: {}]   ;;  %s2387_s3 = inlined_call_operand.hbm [shape: f32[16,256], index: 3, kind: output, shape index: {}]  }
   0x1   :  { %8 = sst [smem:[#allocation3]] %s2384_s0 }
   0x2   :  { %9 = vsyncpa [#allocation5], 0 }
   0x3   :  { %11 = vsyncpa [#allocation5 + $0x1], 0 }
   0x4   :  { %12 = vsyncpa [#allocation6], 0 }
   0x5   :  { %14 = vsyncpa [#allocation6 + $0x1], 0  ;;  %s1678_s14 = smov 0   ;;  %s1680_s15 = smov 0  }
   0x6   :  { %s1682_s16 = smov 0   ;;  %s1684_s17 = smov 0  }
   0x7 LB: > { %s1699_s0 = sadd.s32 4294967295, %s1649_s17   ;;  %s1293_s18 = sadd.s32 4294967294, %s1649_s17   ;;  %s1649_s17 = sphi %s1684_s17, %s2400_s17   ;;  %s1645_s16 = sphi %s1682_s16, %s2399_s16   ;;  %s1641_s15 = sphi %s1680_s15, %s2398_s15   ;;  %s1637_s14 = sphi %s1678_s14, %s2397_s14  }
   0x8   : > { %s1703_s19 = sadd.s32 1, %s1649_s17   ;;  %s27_s20 = sadd.s32 1, %s1645_s16 }
   0x9   : > { %s24_s21 = ssub.s32 %s1649_s17, %s1703_s19  ;;  %p34_p0 = scmp.ne.s32.totalorder %s1645_s16, %s1641_s15 }
   0xa   : > { %p25_p1 = scmp.eq.s32.totalorder %s24_s21, 0  ;;  %p35_p2 = scmp.eq.s32.totalorder %s1649_s17, 0 }
   0xb   : > { %p40_p3 = scmp.ne.s32.totalorder %s1641_s15, %s1637_s14  ;;  %p41_p4 = scmp.eq.s32.totalorder %s1699_s0, 0 }
   0xc   : > { %s1715_s22 = scalar_select %p25_p1, %s1645_s16, %s27_s20  }
   0xd   : > { %p1717_p5 = por %p35_p2, %p34_p0  ;;  %p1721_p6 = por %p41_p4, %p40_p3 }
   0xe   : > { %p85_p7 = scmp.eq.s32.totalorder %s1699_s0, 1  ;;  %p91_p8 = scmp.eq.s32.totalorder %s1293_s18, 1 }
   0xf   : > { %p1341_p10 = scmp.lt.s32.totalorder %s1649_s17, 2  ;;  %s114_s27 = sand.u32 1, %s1645_s16  }
  0x10   : > { %p1728_p11 = por %p85_p7, %p34_p0  ;;  %p1732_p12 = por %p91_p8, %p40_p3 }
  0x11   : > { %s1327_s28 = sshll.u32 %s1649_s17, 11  ;;  %s1296_s29 = sshll.u32 %s114_s27, 7 }
  0x12   : > { %s2391_s25 = scalar_select %p1728_p11, 1, 0 }
  0x13   : > { %s2392_s26 = scalar_select %p1732_p12, 1, 0 }
  0x14   : > { %s1741_s5 = scalar_lea.hbm %s2385_s1, %s1327_s28  ;;  %s118_s6 = scalar_lea.vmem [#allocation4], %s1296_s29 }
  0x15   : > { %s126_s7 = sshll.u32 %s118_s6, 4  ;;  %p1745_p13 = pnand %p1341_p10, %p1717_p5  ;;  %s1749_s7 = int_to_ptr.vmem [resolvable:$true] %s126_s7 }
  0x16   : > { %s1751_s9 = scalar_lea.sflag [#allocation5], %s114_s27  ;;  %s1553_s10 = scalar_lea.hbm %s1741_s5, 2048 }
  0x17   : > { %p1554_p0 = scmp.ne.s32.totalorder %s1741_s5, %s1553_s10  ;;  %p1555_p1 = pneg %p1745_p13 }
  0x18   : > { %s1558_s13 = scalar_lea.hbm %s2385_s1, 4096  ;;  %p1559_p4 = scmp.lt.u32.totalorder %s1741_s5, %s2385_s1 }
  0x19   : > { %p1556_p2 = pnand %p1555_p1, %p1554_p0  ;;  %p1560_p5 = scmp.lt.u32.totalorder %s1558_s13, %s1553_s10 }
  0x1a   : > { %p1562_p8 = scmp.lt.u32.totalorder %s1553_s10, %s1741_s5 }
  0x1b   : > { %p1557_p3 = pneg %p1556_p2  ;;  %p1561_p7 = por %p1560_p5, %p1559_p4 }
  0x1d   : > { %p1563_p10 = por %p1562_p8, %p1561_p7 }
  0x1f   : > { %p1564_p9 = pnand %p1563_p10, %p1557_p3 }
  0x21   : > { %1567 = shalt.err (!%p1564_p9)
}
  0x22   : > { %s1568_s21 = scalar_lea.vmem %s1749_s7, 2048  ;;  %s1651_s23 = smov [#allocation4]  }
  0x23   : > { %p1569_p0 = scmp.ne.s32.totalorder %s1749_s7, %s1568_s21  ;;  %s1573_s27 = sshll.u32 %s1651_s23, 4  ;;  %s1574_s27 = int_to_ptr.vmem [resolvable:$false] %s1573_s27 }
  0x24   : > { %s1575_s28 = scalar_lea.vmem %s1574_s27, 4096  ;;  %p1576_p11 = scmp.lt.s32.totalorder %s1749_s7, %s1574_s27 }
  0x25   : > { %p1571_p2 = pnand %p1569_p0, %p1555_p1  ;;  %p1577_p4 = scmp.lt.s32.totalorder %s1575_s28, %s1568_s21 }
  0x27   : > { %p1572_p12 = pneg %p1571_p2  ;;  %p1578_p5 = por %p1577_p4, %p1576_p11 }
  0x29   : > { %p1579_p7 = pnand %p1578_p5, %p1572_p12 }
  0x2b   : > { %1582 = shalt.err (!%p1579_p7)
}
  0x2c   : > { %s1652_s29 = smov 128   ;;  %s1653_s30 = smov 8  }
  0x2d   : > { %1336 = dma.hbm_to_vmem [thread:$0]  (!%p1745_p13), %s1741_s5, 2048, %s1749_s7, %s1751_s9, %s1652_s29, %s1652_s29, %s1653_s30  }
  0x2e   : > { %p1300_p9 = scmp.ge.s32.totalorder %s1649_s17, 1  ;;  %p134_p1 = scmp.lt.s32.totalorder %s1649_s17, 3 }
  0x30   : > { %p135_p3 = pnand %p1300_p9, %p134_p1 }
  0x31   : > { %s1782_s4 = sand.u32 (!%p135_p3), 1, %s1641_s15  }
  0x32   : > { %138 = sbr.rel (%p135_p3) target bundleno = 395 (0x18b), region = 28  ;;  %s1301_s6 = sshll.u32 (!%p135_p3), %s1782_s4, 7 }
  0x33   : > { %s141_s10 = scalar_lea.sflag (!%p135_p3), [#allocation5], %s1782_s4  ;;  %s1786_s11 = scalar_lea.vmem (!%p135_p3), [#allocation4], %s1301_s6 }
  0x39   : > { %1628 = dma.done.wait (%p1721_p6), %s141_s10, 2048  }
  0x3a   : > { %1630 = vsyncadd (%p1721_p6), %s141_s10, 4294965248  ;;  %v168_v0 = vld [vmem:[%s1786_s11 + $0x10] sm:$0xff]  ;;  %v1303_v1 = vld [vmem:[%s2386_s2] ss:$0 sm:$0xff]  ;;  %s1304_s24 = sshll.u32 %s1699_s0, 3  ;;  %v510_v34 = vlaneseq  ;;  %s509_s8 = sld [smem:[#allocation3]] }
  0x3b   : > { %v166_v2 = vld [vmem:[%s1786_s11] sm:$0xff]  ;;  %v191_v3 = vmul.f32 %v1303_v1, %v168_v0  ;;  %v169_v5 = vld [vmem:[%s1786_s11 + $0x18] sm:$0xff]  ;;  %v167_v6 = vld [vmem:[%s1786_s11 + $0x8] sm:$0xff]  ;;  %v1812_v33 = vstv %s1304_s24  ;;  %vm1175_vm0 = vcmask 1041409   ;;  %vm1177_vm1 = vcmask 1042434   ;;  %s1302_s12 = sshll.u32 %s1782_s4, 4 }
  0x3c   : > { %v189_v4 = vmul.f32 %v1303_v1, %v166_v2  ;;  %v192_v7 = vmul.f32 %v1303_v1, %v169_v5  ;;  %v190_v8 = vmul.f32 %v1303_v1, %v167_v6  ;;  %v171_v9 = vld [vmem:[%s1786_s11 + $0x28] sm:$0xff]  ;;  %v170_v10 = vld [vmem:[%s1786_s11 + $0x20] sm:$0xff]  ;;  %v173_v13 = vld [vmem:[%s1786_s11 + $0x38] sm:$0xff]  ;;  %v517_v35 = vadd.s32 1, %v1812_v33  ;;  %s2297_s13 = scalar_lea.vmem [#allocation7], %s1302_s12  ;;  %s1328_s18 = sshll.u32 %s1699_s0, 8 }
  0x3d   : > { %209 = vadd.xlane.f32.xlu1 %v191_v3  ;;  %v194_v11 = vmul.f32 %v1303_v1, %v171_v9  ;;  %v193_v12 = vmul.f32 %v1303_v1, %v170_v10  ;;  %v172_v14 = vld [vmem:[%s1786_s11 + $0x30] sm:$0xff]  ;;  %v196_v15 = vmul.f32 %v1303_v1, %v173_v13  ;;  %v175_v17 = vld [vmem:[%s1786_s11 + $0x48] sm:$0xff]  ;;  %v174_v18 = vld [vmem:[%s1786_s11 + $0x40] sm:$0xff]  ;;  %v1815_v36 = vshrl.u32 %v510_v34, 7  ;;  %s1223_s20 = sshll.u32 %s2297_s13, 4  ;;  %s2338_s27 = scalar_lea.hbm %s2387_s3, %s1328_s18  ;;  %s2340_s20 = int_to_ptr.vmem [resolvable:$true] %s1223_s20 }
  0x3e   : > { %205 = vadd.xlane.f32.xlu0 %v189_v4  ;;  %v195_v16 = vmul.f32 %v1303_v1, %v172_v14  ;;  %v198_v19 = vmul.f32 %v1303_v1, %v175_v17  ;;  %v197_v20 = vmul.f32 %v1303_v1, %v174_v18  ;;  %v177_v21 = vld [vmem:[%s1786_s11 + $0x58] sm:$0xff]  ;;  %v176_v22 = vld [vmem:[%s1786_s11 + $0x50] sm:$0xff]  ;;  %v179_v25 = vld [vmem:[%s1786_s11 + $0x68] sm:$0xff]  ;;  %v525_v37 = vmul.u32 16, %v517_v35  ;;  %s1209_s0 = scalar_lea.sflag [#allocation6], %s1782_s4  ;;  %s1583_s28 = scalar_lea.vmem %s2340_s20, 256 }
  0x3f   : > { %v200_v23 = vmul.f32 %v1303_v1, %v177_v21  ;;  %v199_v24 = vmul.f32 %v1303_v1, %v176_v22  ;;  %v178_v26 = vld [vmem:[%s1786_s11 + $0x60] sm:$0xff]  ;;  %v202_v27 = vmul.f32 %v1303_v1, %v179_v25  ;;  %v181_v29 = vld [vmem:[%s1786_s11 + $0x78] sm:$0xff]  ;;  %v180_v30 = vld [vmem:[%s1786_s11 + $0x70] sm:$0xff]  ;;  %v1818_v38 = vadd.s32 8, %v1815_v36  ;;  %p1584_p6 = scmp.ne.s32.totalorder %s2340_s20, %s1583_s28  ;;  %p2394_p11 = scmp.ne.s32.totalorder %s2391_s25, 0 }
  0x40   : > { %v201_v28 = vmul.f32 %v1303_v1, %v178_v26  ;;  %v204_v31 = vmul.f32 %v1303_v1, %v181_v29  ;;  %v203_v32 = vmul.f32 %v1303_v1, %v180_v30  ;;  %v534_v39 = vadd.s32 %v525_v37, %v1815_v36  ;;  %s580_s9 = smul.u32 2654435761, %s509_s8  ;;  %s1654_s29 = smov [#allocation7]  }
  0x41   : > { %211 = vadd.xlane.f32.xlu1 %v192_v7  ;;  %v524_v40 = vmul.u32 16, %v1812_v33  ;;  %v518_v41 = vadd.s32 2, %v1812_v33  ;;  %v535_v42 = vadd.s32 %v525_v37, %v1818_v38  ;;  %v519_v43 = vadd.s32 3, %v1812_v33  ;;  %p1585_p12 = pnand %p1584_p6, %p2394_p11  ;;  %s1587_s30 = sshll.u32 %s1654_s29, 4  ;;  %s1588_s30 = int_to_ptr.vmem [resolvable:$false] %s1587_s30 }
  0x42   : > { %207 = vadd.xlane.f32.xlu0 %v190_v8  ;;  %v1825_v44 = vand.u32 127, %v510_v34  ;;  %v550_v45 = vmul.u32 128, %v534_v39  ;;  %v1830_v53 = vstv %s580_s9  ;;  %vm1179_vm2 = vcmask 1043459   ;;  %s1589_s6 = scalar_lea.vmem %s1588_s30, 512  ;;  %p1590_p8 = scmp.lt.s32.totalorder %s2340_s20, %s1588_s30 }
  0x43   : > { %v532_v46 = vadd.s32 %v524_v40, %v1815_v36  ;;  %v526_v47 = vmul.u32 16, %v518_v41  ;;  %v551_v48 = vmul.u32 128, %v535_v42  ;;  %v533_v49 = vadd.s32 %v524_v40, %v1818_v38  ;;  %p1586_p13 = pneg %p1585_p12  ;;  %p1591_p10 = scmp.lt.s32.totalorder %s1589_s6, %s1583_s28 }
  0x44   : > { %v527_v50 = vmul.u32 16, %v519_v43  ;;  %v566_v51 = vadd.s32 %v550_v45, %v1825_v44  ;;  %v1853_v42 = vadd.s32 5, %v1812_v33  ;;  %vm1181_vm3 = vcmask 1044484  }
  0x45   : > { %215 = vadd.xlane.f32.xlu1 %v194_v11  ;;  %v548_v52 = vmul.u32 128, %v532_v46  ;;  %v536_v54 = vadd.s32 %v526_v47, %v1815_v36  ;;  %v537_v55 = vadd.s32 %v526_v47, %v1818_v38  ;;  %v567_v56 = vadd.s32 %v551_v48, %v1825_v44  ;;  %p1592_p0 = por %p1591_p10, %p1590_p8 }
  0x46   : > { %213 = vadd.xlane.f32.xlu0 %v193_v12  ;;  %v549_v57 = vmul.u32 128, %v533_v49  ;;  %v538_v58 = vadd.s32 %v527_v50, %v1815_v36  ;;  %v584_v59 = vxor.u32 %v1830_v53, %v566_v51  ;;  %v539_v18 = vadd.s32 %v527_v50, %v1818_v38 }
  0x47   : > { %v564_v60 = vadd.s32 %v548_v52, %v1825_v44  ;;  %v552_v61 = vmul.u32 128, %v536_v54  ;;  %v553_v62 = vmul.u32 128, %v537_v55  ;;  %v585_v63 = vxor.u32 %v1830_v53, %v567_v56  ;;  %p1593_p2 = pnand %p1592_p0, %p1586_p13 }
  0x48   : > { %v565_v0 = vadd.s32 %v549_v57, %v1825_v44  ;;  %v554_v1 = vmul.u32 128, %v538_v58  ;;  %v600_v2 = vshrl.u32 %v584_v59, 16  ;;  %v529_v55 = vmul.u32 16, %v1853_v42 }
  0x49   : > { %219 = vadd.xlane.f32.xlu1 %v196_v15  ;;  %v582_v3 = vxor.u32 %v1830_v53, %v564_v60  ;;  %v568_v4 = vadd.s32 %v552_v61, %v1825_v44  ;;  %v569_v5 = vadd.s32 %v553_v62, %v1825_v44  ;;  %v601_v6 = vshrl.u32 %v585_v63, 16 }
  0x4a   : > { %217 = vadd.xlane.f32.xlu0 %v195_v16  ;;  %v583_v7 = vxor.u32 %v1830_v53, %v565_v0  ;;  %v570_v8 = vadd.s32 %v554_v1, %v1825_v44  ;;  %v616_v9 = vxor.u32 %v600_v2, %v584_v59  ;;  %v542_v2 = vadd.s32 %v529_v55, %v1815_v36 }
  0x4b   : > { %v598_v10 = vshrl.u32 %v582_v3, 16  ;;  %v586_v11 = vxor.u32 %v1830_v53, %v568_v4  ;;  %v587_v12 = vxor.u32 %v1830_v53, %v569_v5  ;;  %v617_v13 = vxor.u32 %v601_v6, %v585_v63 }
  0x4c   : > { %v599_v14 = vshrl.u32 %v583_v7, 16  ;;  %v588_v15 = vxor.u32 %v1830_v53, %v570_v8  ;;  %v632_v16 = vmul.u32 2146121005, %v616_v9  ;;  %vm1183_vm4 = vcmask 1045509  }
  0x4d   : > { %223 = vadd.xlane.f32.xlu1 %v198_v19  ;;  %v614_v17 = vxor.u32 %v598_v10, %v582_v3  ;;  %v602_v19 = vshrl.u32 %v586_v11, 16  ;;  %v603_v21 = vshrl.u32 %v587_v12, 16  ;;  %v633_v22 = vmul.u32 2146121005, %v617_v13 }
  0x4e   : > { %221 = vadd.xlane.f32.xlu0 %v197_v20  ;;  %v520_v20 = vadd.s32 4, %v1812_v33  ;;  %v648_v25 = vshrl.u32 %v632_v16, 15  ;;  %v558_v13 = vmul.u32 128, %v542_v2  ;;  %vm1185_vm5 = vcmask 1046534  }
  0x4f   : > { %v630_v26 = vmul.u32 2146121005, %v614_v17  ;;  %v619_v30 = vxor.u32 %v603_v21, %v587_v12  ;;  %vm1187_vm6 = vcmask 1047559  }
  0x50   : > { %v528_v29 = vmul.u32 16, %v520_v20  ;;  %v664_v35 = vxor.u32 %v648_v25, %v632_v16 }
  0x51   : > { %227 = vadd.xlane.f32.xlu1 %v200_v23  ;;  %v615_v23 = vxor.u32 %v599_v14, %v583_v7  ;;  %v646_v37 = vshrl.u32 %v630_v26, 15  ;;  %v635_v43 = vmul.u32 2146121005, %v619_v30 }
  0x52   : > { %225 = vadd.xlane.f32.xlu0 %v199_v24  ;;  %v604_v24 = vshrl.u32 %v588_v15, 16  ;;  %v540_v41 = vadd.s32 %v528_v29, %v1815_v36  ;;  %v541_v45 = vadd.s32 %v528_v29, %v1818_v38  ;;  %v680_v49 = vmul.u32 2221713035, %v664_v35 }
  0x53   : > { %v662_v50 = vxor.u32 %v646_v37, %v630_v26  ;;  %v651_v56 = vshrl.u32 %v635_v43, 15 }
  0x54   : > { %v620_v34 = vxor.u32 %v604_v24, %v588_v15  ;;  %v556_v54 = vmul.u32 128, %v540_v41  ;;  %v557_v57 = vmul.u32 128, %v541_v45  ;;  %v696_v61 = vshrl.u32 %v680_v49, 16 }
  0x55   : > { %231 = vadd.xlane.f32.xlu1 %v202_v27  ;;  %v555_v27 = vmul.u32 128, %v539_v18  ;;  %v678_v62 = vmul.u32 2221713035, %v662_v50  ;;  %v667_v3 = vxor.u32 %v651_v56, %v635_v43  ;;  %v574_v24 = vadd.s32 %v558_v13, %v1825_v44 }
  0x56   : > { %229 = vadd.xlane.f32.xlu0 %v201_v28  ;;  %v618_v28 = vxor.u32 %v602_v19, %v586_v11  ;;  %v636_v48 = vmul.u32 2146121005, %v620_v34  ;;  %v572_v1 = vadd.s32 %v556_v54, %v1825_v44  ;;  %v573_v4 = vadd.s32 %v557_v57, %v1825_v44 }
  0x57   : > { %v571_v39 = vadd.s32 %v555_v27, %v1825_v44  ;;  %v712_v8 = vxor.u32 %v696_v61, %v680_v49  ;;  %v694_v9 = vshrl.u32 %v678_v62, 16  ;;  %v683_v14 = vmul.u32 2221713035, %v667_v3 }
  0x58   : > { %v634_v40 = vmul.u32 2146121005, %v618_v28  ;;  %v652_v60 = vshrl.u32 %v636_v48, 15  ;;  %v590_v12 = vxor.u32 %v1830_v53, %v572_v1  ;;  %v591_v15 = vxor.u32 %v1830_v53, %v573_v4 }
  0x59   : > { %235 = vadd.xlane.f32.xlu1 %v204_v31  ;;  %v649_v31 = vshrl.u32 %v633_v22, 15  ;;  %v589_v51 = vxor.u32 %v1830_v53, %v571_v39  ;;  %v728_v19 = vshrl.u32 %v712_v8, 9  ;;  %v710_v20 = vxor.u32 %v694_v9, %v678_v62 }
  0x5a   : > { %233 = vadd.xlane.f32.xlu0 %v203_v32  ;;  %v631_v32 = vmul.u32 2146121005, %v615_v23  ;;  %v650_v52 = vshrl.u32 %v634_v40, 15  ;;  %v668_v7 = vxor.u32 %v652_v60, %v636_v48  ;;  %v606_v23 = vshrl.u32 %v590_v12, 16 }
  0x5b   : > { %v665_v46 = vxor.u32 %v649_v31, %v633_v22  ;;  %v605_v63 = vshrl.u32 %v589_v51, 16  ;;  %v699_v25 = vshrl.u32 %v683_v14, 16  ;;  %v607_v26 = vshrl.u32 %v591_v15, 16 }
  0x5c   : > { %v647_v47 = vshrl.u32 %v631_v32, 15  ;;  %v666_v0 = vxor.u32 %v650_v52, %v634_v40  ;;  %v684_v18 = vmul.u32 2221713035, %v668_v7  ;;  %v744_v30 = vor.u32 1065353216, %v728_v19 }
  0x5d   : > { %v681_v58 = vmul.u32 2221713035, %v665_v46  ;;  %v621_v10 = vxor.u32 %v605_v63, %v589_v51  ;;  %v726_v31 = vshrl.u32 %v710_v20, 9  ;;  %v622_v35 = vxor.u32 %v606_v23, %v590_v12 }
  0x5e   : > { %v663_v59 = vxor.u32 %v647_v47, %v631_v32  ;;  %v682_v11 = vmul.u32 2221713035, %v666_v0  ;;  %v700_v29 = vshrl.u32 %v684_v18, 16  ;;  %v592_v37 = vxor.u32 %v1830_v53, %v574_v24 }
  0x5f   : > { %v697_v5 = vshrl.u32 %v681_v58, 16  ;;  %v637_v21 = vmul.u32 2146121005, %v621_v10  ;;  %v715_v39 = vxor.u32 %v699_v25, %v683_v14  ;;  %v623_v40 = vxor.u32 %v607_v26, %v591_v15 }
  0x60   : > { %v679_v6 = vmul.u32 2221713035, %v663_v59  ;;  %v698_v22 = vshrl.u32 %v682_v11, 16  ;;  %v716_v45 = vxor.u32 %v700_v29, %v684_v18  ;;  %v1307_v46 = vadd.f32 -1.0, %v744_v30 }
  0x61   : > { %v713_v16 = vxor.u32 %v697_v5, %v681_v58  ;;  %v653_v32 = vshrl.u32 %v637_v21, 15  ;;  %v742_v47 = vor.u32 1065353216, %v726_v31  ;;  %v638_v50 = vmul.u32 2146121005, %v622_v35 }
  0x62   : > { %v695_v17 = vshrl.u32 %v679_v6, 16  ;;  %v714_v34 = vxor.u32 %v698_v22, %v682_v11  ;;  %v608_v51 = vshrl.u32 %v592_v37, 16  ;;  %v731_v52 = vshrl.u32 %v715_v39, 9 }
  0x63   : > { %v729_v27 = vshrl.u32 %v713_v16, 9  ;;  %v669_v48 = vxor.u32 %v653_v32, %v637_v21  ;;  %v639_v54 = vmul.u32 2146121005, %v623_v40  ;;  %v732_v58 = vshrl.u32 %v716_v45, 9 }
  0x64   : > { %v711_v28 = vxor.u32 %v695_v17, %v679_v6  ;;  %v730_v49 = vshrl.u32 %v714_v34, 9  ;;  %v792_v59 = vmax.f32 %v1307_v46, 1e-06  ;;  %v1305_v60 = vadd.f32 -1.0, %v742_v47 }
  0x65   : > { %v745_v41 = vor.u32 1065353216, %v729_v27  ;;  %v685_v61 = vmul.u32 2221713035, %v669_v48  ;;  %v654_v63 = vshrl.u32 %v638_v50, 15  ;;  %v624_v0 = vxor.u32 %v608_v51, %v592_v37 }
  0x66   : > { %v727_v43 = vshrl.u32 %v711_v28, 9  ;;  %v746_v62 = vor.u32 1065353216, %v730_v49  ;;  %v747_v1 = vor.u32 1065353216, %v731_v52  ;;  %v655_v2 = vshrl.u32 %v639_v54, 15 }
  0x67   : > { %v1308_v56 = vadd.f32 -1.0, %v745_v41  ;;  %v748_v5 = vor.u32 1065353216, %v732_v58  ;;  %v1867_v6 = vmin.f32 %v792_v59, 0.999999  ;;  %v790_v7 = vmax.f32 %v1305_v60, 1e-06 }
  0x68   : > { %v743_v57 = vor.u32 1065353216, %v727_v43  ;;  %v701_v8 = vshrl.u32 %v685_v61, 16  ;;  %v1309_v9 = vadd.f32 -1.0, %v746_v62  ;;  %v670_v10 = vxor.u32 %v654_v63, %v638_v50 }
  0x69   : > { %v793_v3 = vmax.f32 %v1308_v56, 1e-06  ;;  %v640_v11 = vmul.u32 2146121005, %v624_v0  ;;  %v522_v12 = vadd.s32 6, %v1812_v33  ;;  %v1310_v13 = vadd.f32 -1.0, %v747_v1 }
  0x6a   : > { %v1306_v4 = vadd.f32 -1.0, %v743_v57  ;;  %v671_v14 = vxor.u32 %v655_v2, %v639_v54  ;;  %v523_v15 = vadd.s32 7, %v1812_v33  ;;  %v1311_v18 = vadd.f32 -1.0, %v748_v5 }
  0x6b   : > { %v1871_v16 = vmin.f32 %v793_v3, 0.999999  ;;  %v824_v19 = vsub.f32 1.0, %v1867_v6  ;;  %v1874_v20 = vmin.f32 %v790_v7, 0.999999  ;;  %v717_v21 = vxor.u32 %v701_v8, %v685_v61 }
  0x6c   : > { %v791_v17 = vmax.f32 %v1306_v4, 1e-06  ;;  %v794_v22 = vmax.f32 %v1309_v9, 1e-06  ;;  %v686_v23 = vmul.u32 2221713035, %v670_v10  ;;  %v543_v34 = vadd.s32 %v529_v55, %v1818_v38 }
  0x6d   : > { %v656_v24 = vshrl.u32 %v640_v11, 15  ;;  %v530_v25 = vmul.u32 16, %v522_v12  ;;  %v795_v26 = vmax.f32 %v1310_v13, 1e-06  ;;  %v687_v27 = vmul.u32 2221713035, %v671_v14 }
  0x6e   : > { %v531_v28 = vmul.u32 16, %v523_v15  ;;  %v825_v29 = vsub.f32 1.0, %v1871_v16  ;;  %v1877_v30 = vmin.f32 %v791_v17, 0.999999  ;;  %v796_v33 = vmax.f32 %v1311_v18, 1e-06 }
  0x6f   : > { %1377 = vrcp.f32 %v824_v19  ;;  %v822_v31 = vsub.f32 1.0, %v1874_v20  ;;  %v733_v32 = vshrl.u32 %v717_v21, 9  ;;  %v1883_v35 = vmin.f32 %v794_v22, 0.999999 }
  0x70   : > { %v702_v37 = vshrl.u32 %v686_v23, 16  ;;  %v672_v39 = vxor.u32 %v656_v24, %v640_v11  ;;  %v544_v40 = vadd.s32 %v530_v25, %v1815_v36  ;;  %v1886_v41 = vmin.f32 %v795_v26, 0.999999 }
  0x71   : > { %v703_v43 = vshrl.u32 %v687_v27, 16  ;;  %v545_v45 = vadd.s32 %v530_v25, %v1818_v38  ;;  %v546_v46 = vadd.s32 %v531_v28, %v1815_v36  ;;  %1379 = vrcp.f32 %v825_v29 }
  0x72   : > { %v823_v47 = vsub.f32 1.0, %v1877_v30  ;;  %v1891_v48 = vmin.f32 %v796_v33, 0.999999  ;;  %1381 = vrcp.f32 %v822_v31  ;;  %v749_v42 = vor.u32 1065353216, %v733_v32 }
  0x73   : > { %v547_v55 = vadd.s32 %v531_v28, %v1818_v38  ;;  %v559_v49 = vmul.u32 128, %v543_v34  ;;  %v826_v50 = vsub.f32 1.0, %v1883_v35  ;;  %v718_v51 = vxor.u32 %v702_v37, %v686_v23 }
  0x74   : > { %v688_v52 = vmul.u32 2221713035, %v672_v39  ;;  %v560_v54 = vmul.u32 128, %v544_v40  ;;  %v827_v56 = vsub.f32 1.0, %v1886_v41  ;;  %v719_v57 = vxor.u32 %v703_v43, %v687_v27 }
  0x75   : > { %v561_v58 = vmul.u32 128, %v545_v45  ;;  %v562_v36 = vmul.u32 128, %v546_v46  ;;  %1383 = vrcp.f32 %v823_v47  ;;  %v828_v59 = vsub.f32 1.0, %v1891_v48 }
  0x76   : > { %v1312_v60 = vadd.f32 -1.0, %v749_v42  ;;  %v563_v61 = vmul.u32 128, %v547_v55  ;;  %v575_v62 = vadd.s32 %v559_v49, %v1825_v44  ;;  %1385 = vrcp.f32 %v826_v50 }
  0x77   : > { %v734_v38 = vshrl.u32 %v718_v51, 9  ;;  %v704_v63 = vshrl.u32 %v688_v52, 16  ;;  %v576_v0 = vadd.s32 %v560_v54, %v1825_v44  ;;  %1387 = vrcp.f32 %v827_v56 }
  0x78   : > { %v735_v2 = vshrl.u32 %v719_v57, 9  ;;  %v577_v3 = vadd.s32 %v561_v58, %v1825_v44  ;;  %v578_v4 = vadd.s32 %v562_v36, %v1825_v44  ;;  %1389 = vrcp.f32 %v828_v59 }
  0x79   : > { %v1378_v1 = vpop.eup %1377  ;;  %v797_v5 = vmax.f32 %v1312_v60, 1e-06  ;;  %v579_v7 = vadd.s32 %v563_v61, %v1825_v44  ;;  %v593_v8 = vxor.u32 %v1830_v53, %v575_v62  ;;  %v750_v10 = vor.u32 1065353216, %v734_v38 }
  0x7a   : > { %v720_v11 = vxor.u32 %v704_v63, %v688_v52  ;;  %v594_v12 = vxor.u32 %v1830_v53, %v576_v0  ;;  %v751_v14 = vor.u32 1065353216, %v735_v2  ;;  %v595_v15 = vxor.u32 %v1830_v53, %v577_v3 }
  0x7b   : > { %v1380_v9 = vpop.eup %1379  ;;  %v596_v17 = vxor.u32 %v1830_v53, %v578_v4  ;;  %v843_v18 = vmul.f32 %v1378_v1, %v1867_v6  ;;  %v1907_v19 = vmin.f32 %v797_v5, 0.999999  ;;  %v597_v21 = vxor.u32 %v1830_v53, %v579_v7 }
  0x7c   : > { %v1382_v13 = vpop.eup %1381  ;;  %v609_v44 = vshrl.u32 %v593_v8, 16  ;;  %v845_v23 = vmul.f32 %v1380_v9, %v1871_v16  ;;  %v1313_v24 = vadd.f32 -1.0, %v750_v10  ;;  %v736_v25 = vshrl.u32 %v720_v11, 9 }
  0x7d   : > { %v610_v26 = vshrl.u32 %v594_v12, 16  ;;  %v1314_v27 = vadd.f32 -1.0, %v751_v14  ;;  %v611_v28 = vshrl.u32 %v595_v15, 16  ;;  %v612_v29 = vshrl.u32 %v596_v17, 16 }
  0x7e   : > { %1391 = vlog2.f32 %v843_v18  ;;  %v839_v31 = vmul.f32 %v1382_v13, %v1874_v20  ;;  %v829_v34 = vsub.f32 1.0, %v1907_v19  ;;  %v613_v53 = vshrl.u32 %v597_v21, 16 }
  0x7f   : > { %v1384_v22 = vpop.eup %1383  ;;  %v625_v37 = vxor.u32 %v609_v44, %v593_v8  ;;  %1393 = vlog2.f32 %v845_v23  ;;  %v798_v16 = vmax.f32 %v1313_v24, 1e-06  ;;  %v752_v40 = vor.u32 1065353216, %v736_v25 }
  0x80   : > { %v1386_v33 = vpop.eup %1385  ;;  %v841_v6 = vmul.f32 %v1384_v22, %v1877_v30  ;;  %v626_v43 = vxor.u32 %v610_v26, %v594_v12  ;;  %v799_v46 = vmax.f32 %v1314_v27, 1e-06  ;;  %v627_v47 = vxor.u32 %v611_v28, %v595_v15 }
  0x81   : > { %v1388_v32 = vpop.eup %1387  ;;  %v847_v45 = vmul.f32 %v1386_v33, %v1883_v35  ;;  %v628_v42 = vxor.u32 %v612_v29, %v596_v17  ;;  %1395 = vlog2.f32 %v839_v31  ;;  %v629_v55 = vxor.u32 %v613_v53, %v597_v21 }
  0x82   : > { %v1390_v39 = vpop.eup %1389  ;;  %v849_v20 = vmul.f32 %v1388_v32, %v1886_v41  ;;  %1397 = vlog2.f32 %v841_v6  ;;  %v641_v49 = vmul.u32 2146121005, %v625_v37  ;;  %v1917_v50 = vmin.f32 %v798_v16, 0.999999 }
  0x83   : > { %v851_v30 = vmul.f32 %v1390_v39, %v1891_v48  ;;  %1399 = vrcp.f32 %v829_v34  ;;  %v1315_v51 = vadd.f32 -1.0, %v752_v40  ;;  %v642_v52 = vmul.u32 2146121005, %v626_v43 }
  0x84   : > { %1401 = vlog2.f32 %v847_v45  ;;  %v1919_v35 = vmin.f32 %v799_v46, 0.999999  ;;  %v643_v57 = vmul.u32 2146121005, %v627_v47  ;;  %v644_v58 = vmul.u32 2146121005, %v628_v42 }
  0x85   : > { %1403 = vlog2.f32 %v849_v20  ;;  %v645_v41 = vmul.u32 2146121005, %v629_v55  ;;  %v657_v36 = vshrl.u32 %v641_v49, 15  ;;  %v830_v48 = vsub.f32 1.0, %v1917_v50 }
  0x86   : > { %1405 = vlog2.f32 %v851_v30  ;;  %v800_v60 = vmax.f32 %v1315_v51, 1e-06  ;;  %v658_v61 = vshrl.u32 %v642_v52, 15  ;;  %v831_v63 = vsub.f32 1.0, %v1919_v35 }
  0x87   : > { %v659_v0 = vshrl.u32 %v643_v57, 15  ;;  %v660_v1 = vshrl.u32 %v644_v58, 15  ;;  %v661_v4 = vshrl.u32 %v645_v41, 15  ;;  %v673_v5 = vxor.u32 %v657_v36, %v641_v49 }
  0x88   : > { %v1392_v59 = vpop.eup %1391  ;;  %v1923_v8 = vmin.f32 %v800_v60, 0.999999  ;;  %v674_v9 = vxor.u32 %v658_v61, %v642_v52 }
  0x89   : > { %v1394_v2 = vpop.eup %1393  ;;  %v875_v3 = vmul.f32 0.6931472, %v1392_v59  ;;  %v675_v13 = vxor.u32 %v659_v0, %v643_v57  ;;  %v676_v14 = vxor.u32 %v660_v1, %v644_v58  ;;  %v677_v44 = vxor.u32 %v661_v4, %v645_v41 }
  0x8a   : > { %v877_v17 = vmul.f32 0.6931472, %v1394_v2  ;;  %v689_v22 = vmul.u32 2221713035, %v673_v5  ;;  %v832_v25 = vsub.f32 1.0, %v1923_v8 }
  0x8b   : > { %v1396_v7 = vpop.eup %1395  ;;  %v904_v21 = vmul.f32 0.5513289, %v875_v3  ;;  %v690_v26 = vmul.u32 2221713035, %v674_v9  ;;  %v691_v31 = vmul.u32 2221713035, %v675_v13 }
  0x8c   : > { %v1398_v10 = vpop.eup %1397  ;;  %v871_v24 = vmul.f32 0.6931472, %v1396_v7  ;;  %v692_v32 = vmul.u32 2221713035, %v676_v14  ;;  %v905_v34 = vmul.f32 0.5513289, %v877_v17 }
  0x8d   : > { %v1400_v15 = vpop.eup %1399  ;;  %v873_v53 = vmul.f32 0.6931472, %v1398_v10  ;;  %v693_v39 = vmul.u32 2221713035, %v677_v44  ;;  %v705_v16 = vshrl.u32 %v689_v22, 16  ;;  %v707_v30 = vshrl.u32 %v691_v31, 16 }
  0x8e   : > { %v1402_v18 = vpop.eup %1401  ;;  %v853_v29 = vmul.f32 %v1400_v15, %v1907_v19  ;;  %v1933_v43 = vmul.f32 1e-05, %v904_v21  ;;  %v1935_v45 = vmul.f32 0.5513289, %v871_v24  ;;  %v706_v19 = vshrl.u32 %v690_v26, 16 }
  0x8f   : > { %v1404_v23 = vpop.eup %1403  ;;  %v708_v55 = vshrl.u32 %v692_v32, 16  ;;  %v1941_v51 = vmul.f32 1e-05, %v905_v34  ;;  %v1943_v52 = vmul.f32 0.5513289, %v873_v53  ;;  %v709_v58 = vshrl.u32 %v693_v39, 16 }
  0x90   : > { %v1406_v27 = vpop.eup %1405  ;;  %v721_v41 = vxor.u32 %v705_v16, %v689_v22  ;;  %v1951_v60 = vmul.f32 0.6931472, %v1404_v23  ;;  %v722_v61 = vxor.u32 %v706_v19, %v690_v26  ;;  %v723_v2 = vxor.u32 %v707_v30, %v691_v31 }
  0x91   : > { %v1956_v3 = vxor.u32 %v708_v55, %v692_v32  ;;  %v1960_v7 = vmul.f32 0.6931472, %v1406_v27  ;;  %v1962_v10 = vxor.u32 %v709_v58, %v693_v39 }
  0x92   : > { %v738_v15 = vshrl.u32 %v722_v61, 9  ;;  %v739_v22 = vshrl.u32 %v723_v2, 9 }
  0x93   : > { %v740_v23 = vshrl.u32 %v1956_v3, 9 }
  0xca   : > { %v210_v54 = vpop.xlane.xlu1 %209 }
  0xcb   : > { %v206_v56 = vpop.xlane.xlu0 %205  ;;  %1407 = vtanh.f32 %v210_v54 }
  0xcc   : > { %1409 = vtanh.f32 %v206_v56 }
  0xce   : > { %v212_v62 = vpop.xlane.xlu1 %211 }
  0xcf   : > { %v208_v38 = vpop.xlane.xlu0 %207  ;;  %1411 = vtanh.f32 %v212_v62 }
  0xd0   : > { %1413 = vtanh.f32 %v208_v38 }
  0xd1   : > { %1415 = vrcp.f32 %v830_v48  ;;  %v1949_v48 = vmul.f32 0.6931472, %v1402_v18 }
  0xd2   : > { %v216_v11 = vpop.xlane.xlu1 %215  ;;  %1417 = vrcp.f32 %v831_v63 }
  0xd3   : > { %v214_v12 = vpop.xlane.xlu0 %213  ;;  %1419 = vtanh.f32 %v216_v11  ;;  %v737_v11 = vshrl.u32 %v721_v41, 9 }
  0xd4   : > { %1421 = vtanh.f32 %v214_v12 }
  0xd5   : > { %v1927_v6 = vpop.eup %1407 }
  0xd6   : > { %v220_v28 = vpop.xlane.xlu1 %219  ;;  %v1929_v37 = vpop.eup %1409 }
  0xd7   : > { %v218_v33 = vpop.xlane.xlu0 %217  ;;  %1423 = vtanh.f32 %v220_v28 }
  0xd8   : > { %1425 = vtanh.f32 %v218_v33  ;;  %v753_v33 = vor.u32 1065353216, %v737_v11 }
  0xd9   : > { %v1931_v40 = vpop.eup %1411  ;;  %1427 = vrcp.f32 %v832_v25 }
  0xda   : > { %v1937_v46 = vpop.eup %1413  ;;  %v260_v47 = vmax.f32 %v1927_v6, %v1931_v40  ;;  %1429 = vlog2.f32 %v853_v29  ;;  %v224_v42 = vpop.xlane.xlu1 %223  ;;  %v741_v29 = vshrl.u32 %v1962_v10, 9  ;;  %v1316_v41 = vadd.f32 -1.0, %v753_v33 }
  0xdb   : > { %v222_v20 = vpop.xlane.xlu0 %221  ;;  %v1416_v49 = vpop.eup %1415  ;;  %v253_v54 = vmax.f32 %v1929_v37, %v1937_v46  ;;  %1431 = vtanh.f32 %v224_v42  ;;  %v754_v42 = vor.u32 1065353216, %v738_v15 }
  0xdc   : > { %v1418_v56 = vpop.eup %1417  ;;  %v261_v57 = vrot.slane %v260_v47, 4  ;;  %1433 = vtanh.f32 %v222_v20  ;;  %v855_v63 = vmul.f32 %v1416_v49, %v1917_v50  ;;  %v755_v20 = vor.u32 1065353216, %v739_v22 }
  0xdd   : > { %v1947_v36 = vpop.eup %1419  ;;  %v254_v59 = vrot.slane %v253_v54, 4  ;;  %v857_v14 = vmul.f32 %v1418_v56, %v1919_v35 }
  0xde   : > { %v1953_v62 = vpop.eup %1421  ;;  %v262_v38 = vmax.f32 %v260_v47, %v261_v57  ;;  %v228_v0 = vpop.xlane.xlu1 %227 }
  0xdf   : > { %v226_v1 = vpop.xlane.xlu0 %225  ;;  %v255_v4 = vmax.f32 %v253_v54, %v254_v59  ;;  %v267_v5 = vmax.f32 %v1953_v62, %v1947_v36  ;;  %1435 = vtanh.f32 %v228_v0 }
  0xe0   : > { %v263_v9 = vrot.slane %v262_v38, 2  ;;  %1437 = vtanh.f32 %v226_v1 }
  0xe1   : > { %v1964_v12 = vpop.eup %1423  ;;  %v256_v50 = vrot.slane %v255_v4, 2  ;;  %v268_v13 = vrot.slane %v267_v5, 4  ;;  %1439 = vlog2.f32 %v855_v63 }
  0xe2   : > { %v1967_v17 = vpop.eup %1425  ;;  %v264_v18 = vmax.f32 %v262_v38, %v263_v9  ;;  %v232_v21 = vpop.xlane.xlu1 %231 }
  0xe3   : > { %v230_v44 = vpop.xlane.xlu0 %229  ;;  %v1428_v24 = vpop.eup %1427  ;;  %v257_v25 = vmax.f32 %v255_v4, %v256_v50  ;;  %v269_v26 = vmax.f32 %v267_v5, %v268_v13  ;;  %v274_v27 = vmax.f32 %v1967_v17, %v1964_v12  ;;  %1441 = vtanh.f32 %v232_v21 }
  0xe4   : > { %v1972_v28 = vpop.eup %1429  ;;  %v265_v35 = vrot.slane %v264_v18, 1  ;;  %1443 = vtanh.f32 %v230_v44  ;;  %v1980_v19 = vmul.f32 %v1428_v24, %v1923_v8  ;;  %v1318_v24 = vadd.f32 -1.0, %v755_v20 }
  0xe5   : > { %v1975_v31 = vpop.eup %1431  ;;  %v258_v32 = vrot.slane %v257_v25, 1  ;;  %v270_v34 = vrot.slane %v269_v26, 2  ;;  %v275_v53 = vrot.slane %v274_v27, 4  ;;  %1445 = vlog2.f32 %v857_v14 }
  0xe6   : > { %v1977_v39 = vpop.eup %1433  ;;  %v266_v16 = vmax.f32 %v264_v18, %v265_v35  ;;  %v236_v47 = vpop.xlane.xlu1 %235 }
  0xe7   : > { %v259_v30 = vmax.f32 %v257_v25, %v258_v32  ;;  %v271_v55 = vmax.f32 %v269_v26, %v270_v34  ;;  %v276_v49 = vmax.f32 %v274_v27, %v275_v53  ;;  %v281_v54 = vmax.f32 %v1977_v39, %v1975_v31  ;;  %v234_v56 = vpop.xlane.xlu0 %233 }
  0xe8   : > { %v311_v57 = vsub.f32 %v1927_v6, %v266_v16  ;;  %v312_v58 = vsub.f32 %v1931_v40, %v266_v16  ;;  %1447 = vtanh.f32 %v236_v47  ;;  %v801_v34 = vmax.f32 %v1316_v41, 1e-06 }
  0xe9   : > { %v1986_v59 = vpop.eup %1435  ;;  %v309_v8 = vsub.f32 %v1929_v37, %v259_v30  ;;  %v310_v61 = vsub.f32 %v1937_v46, %v259_v30  ;;  %v272_v38 = vrot.slane %v271_v55, 1  ;;  %v277_v63 = vrot.slane %v276_v49, 2 }
  0xea   : > { %v1990_v0 = vpop.eup %1437  ;;  %v329_v1 = vmul.f32 1.442695, %v311_v57  ;;  %v331_v2 = vmul.f32 1.442695, %v312_v58  ;;  %v282_v4 = vrot.slane %v281_v54, 4  ;;  %1449 = vtanh.f32 %v234_v56 }
  0xeb   : > { %v325_v5 = vmul.f32 1.442695, %v309_v8  ;;  %v327_v6 = vmul.f32 1.442695, %v310_v61  ;;  %v273_v9 = vmax.f32 %v271_v55, %v272_v38  ;;  %v278_v40 = vmax.f32 %v276_v49, %v277_v63  ;;  %v1992_v11 = vpop.eup %1439 }
  0xec   : > { %1451 = vpow2.f32 %v329_v1  ;;  %v283_v50 = vmax.f32 %v281_v54, %v282_v4  ;;  %v288_v37 = vmax.f32 %v1990_v0, %v1986_v59  ;;  %v1317_v46 = vadd.f32 -1.0, %v754_v42 }
  0xed   : > { %v1996_v13 = vpop.eup %1441  ;;  %1453 = vpow2.f32 %v331_v2  ;;  %v313_v14 = vsub.f32 %v1953_v62, %v273_v9  ;;  %v314_v15 = vsub.f32 %v1947_v36, %v273_v9  ;;  %v279_v18 = vrot.slane %v278_v40, 1 }
  0xee   : > { %v2000_v21 = vpop.eup %1443  ;;  %1455 = vpow2.f32 %v325_v5  ;;  %v284_v44 = vrot.slane %v283_v50, 2  ;;  %v289_v22 = vrot.slane %v288_v37, 4  ;;  %v802_v16 = vmax.f32 %v1317_v46, 1e-06 }
  0xef   : > { %v2002_v25 = vpop.eup %1445  ;;  %1457 = vpow2.f32 %v327_v6  ;;  %v333_v26 = vmul.f32 1.442695, %v313_v14  ;;  %v335_v27 = vmul.f32 1.442695, %v314_v15  ;;  %v280_v35 = vmax.f32 %v278_v40, %v279_v18 }
  0xf0   : > { %v285_v33 = vmax.f32 %v283_v50, %v284_v44  ;;  %v290_v32 = vmax.f32 %v288_v37, %v289_v22  ;;  %v295_v62 = vmax.f32 %v2000_v21, %v1996_v13  ;;  %v756_v54 = vor.u32 1065353216, %v740_v23 }
  0xf1   : > { %1459 = vpow2.f32 %v333_v26  ;;  %v315_v36 = vsub.f32 %v1967_v17, %v280_v35  ;;  %v316_v53 = vsub.f32 %v1964_v12, %v280_v35  ;;  %v757_v56 = vor.u32 1065353216, %v741_v29 }
  0xf2   : > { %v2008_v47 = vpop.eup %1447  ;;  %1461 = vpow2.f32 %v335_v27  ;;  %v286_v42 = vrot.slane %v285_v33, 1  ;;  %v291_v20 = vrot.slane %v290_v32, 2  ;;  %v296_v30 = vrot.slane %v295_v62, 4 }
  0xf3   : > { %v337_v55 = vmul.f32 1.442695, %v315_v36  ;;  %v339_v49 = vmul.f32 1.442695, %v316_v53  ;;  %v803_v41 = vmax.f32 %v1318_v24, 1e-06 }
  0xf4   : > { %v2014_v57 = vpop.eup %1449  ;;  %v287_v17 = vmax.f32 %v285_v33, %v286_v42  ;;  %v292_v58 = vmax.f32 %v290_v32, %v291_v20  ;;  %v297_v12 = vmax.f32 %v295_v62, %v296_v30  ;;  %v2018_v61 = vmin.f32 %v801_v34, 0.999999 }
  0xf5   : > { %1463 = vpow2.f32 %v337_v55  ;;  %v302_v8 = vmax.f32 %v2014_v57, %v2008_v47  ;;  %v2020_v38 = vmin.f32 %v802_v16, 0.999999  ;;  %v2028_v4 = vadd.f32 -1.0, %v756_v54 }
  0xf6   : > { %v2022_v63 = vpop.eup %1451  ;;  %1465 = vpow2.f32 %v339_v49  ;;  %v317_v3 = vsub.f32 %v1977_v39, %v287_v17  ;;  %v318_v10 = vsub.f32 %v1975_v31, %v287_v17  ;;  %v293_v23 = vrot.slane %v292_v58, 1 }
  0xf7   : > { %v2026_v29 = vpop.eup %1453  ;;  %v298_v1 = vrot.slane %v297_v12, 2  ;;  %v303_v2 = vrot.slane %v302_v8, 4  ;;  %v2030_v5 = vadd.f32 -1.0, %v757_v56  ;;  %v2038_v46 = vmin.f32 %v803_v41, 0.999999 }
  0xf8   : > { %v2032_v6 = vpop.eup %1455  ;;  %v364_v9 = vadd.f32 %v2026_v29, %v2022_v63  ;;  %v341_v40 = vmul.f32 1.442695, %v317_v3  ;;  %v343_v50 = vmul.f32 1.442695, %v318_v10  ;;  %v294_v37 = vmax.f32 %v292_v58, %v293_v23 }
  0xf9   : > { %v2036_v39 = vpop.eup %1457  ;;  %v299_v31 = vmax.f32 %v297_v12, %v298_v1  ;;  %v833_v14 = vsub.f32 1.0, %v2018_v61  ;;  %v834_v15 = vsub.f32 1.0, %v2020_v38  ;;  %v804_v35 = vmax.f32 %v2028_v4, 1e-06 }
  0xfa   : > { %v365_v18 = vrot.slane %v364_v9, 4  ;;  %v357_v44 = vadd.f32 %v2036_v39, %v2032_v6  ;;  %1467 = vpow2.f32 %v341_v40  ;;  %v319_v22 = vsub.f32 %v1990_v0, %v294_v37 }
  0xfb   : > { %v2045_v24 = vpop.eup %1459  ;;  %1469 = vpow2.f32 %v343_v50  ;;  %v320_v26 = vsub.f32 %v1986_v59, %v294_v37  ;;  %v300_v27 = vrot.slane %v299_v31, 1  ;;  %v304_v36 = vmax.f32 %v302_v8, %v303_v2 }
  0xfc   : > { %v2049_v33 = vpop.eup %1461  ;;  %v366_v32 = vadd.f32 %v365_v18, %v364_v9  ;;  %v358_v62 = vrot.slane %v357_v44, 4  ;;  %v345_v34 = vmul.f32 1.442695, %v319_v22  ;;  %1471 = vrcp.f32 %v833_v14 }
  0xfd   : > { %v371_v53 = vadd.f32 %v2049_v33, %v2045_v24  ;;  %v347_v16 = vmul.f32 1.442695, %v320_v26  ;;  %v301_v42 = vmax.f32 %v299_v31, %v300_v27  ;;  %v835_v30 = vsub.f32 1.0, %v2038_v46 }
  0xfe   : > { %v367_v0 = vrot.slane %v366_v32, 2  ;;  %v359_v20 = vadd.f32 %v358_v62, %v357_v44  ;;  %1473 = vrcp.f32 %v834_v15  ;;  %v305_v12 = vrot.slane %v304_v36, 2 }
  0xff   : > { %v2054_v59 = vpop.eup %1463  ;;  %v372_v55 = vrot.slane %v371_v53, 4  ;;  %1475 = vpow2.f32 %v345_v34  ;;  %v321_v49 = vsub.f32 %v2000_v21, %v301_v42  ;;  %v322_v54 = vsub.f32 %v1996_v13, %v301_v42 }
 0x100   : > { %v2058_v56 = vpop.eup %1465  ;;  %v368_v17 = vadd.f32 %v367_v0, %v366_v32  ;;  %v360_v58 = vrot.slane %v359_v20, 2  ;;  %1477 = vpow2.f32 %v347_v16  ;;  %v805_v21 = vmax.f32 %v2030_v5, 1e-06 }
 0x101   : > { %v373_v41 = vadd.f32 %v372_v55, %v371_v53  ;;  %v378_v8 = vadd.f32 %v2058_v56, %v2054_v59  ;;  %v349_v3 = vmul.f32 1.442695, %v321_v49  ;;  %v351_v10 = vmul.f32 1.442695, %v322_v54 }
 0x102   : > { %v369_v23 = vrot.slane %v368_v17, 1  ;;  %v361_v1 = vadd.f32 %v360_v58, %v359_v20  ;;  %1479 = vlog2.f32 %v1980_v19  ;;  %v885_v13 = vmul.f32 0.6931472, %v1972_v28 }
 0x103   : > { %v374_v2 = vrot.slane %v373_v41, 2  ;;  %v379_v4 = vrot.slane %v378_v8, 4  ;;  %1481 = vpow2.f32 %v349_v3  ;;  %v306_v37 = vmax.f32 %v304_v36, %v305_v12 }
 0x104   : > { %v2065_v9 = vpop.eup %1467  ;;  %v370_v40 = vadd.f32 %v369_v23, %v368_v17  ;;  %v362_v50 = vrot.slane %v361_v1, 1  ;;  %1483 = vpow2.f32 %v351_v10  ;;  %v2069_v18 = vmin.f32 %v804_v35, 0.999999 }
 0x105   : > { %v2067_v31 = vpop.eup %1469  ;;  %v375_v14 = vadd.f32 %v374_v2, %v373_v41  ;;  %v380_v15 = vadd.f32 %v379_v4, %v378_v8  ;;  %1485 = vrcp.f32 %v835_v30  ;;  %v2073_v5 = vmin.f32 %v805_v21, 0.999999 }
 0x106   : > { %1487 = vrcp.f32 %v370_v40  ;;  %v363_v19 = vadd.f32 %v362_v50, %v361_v1  ;;  %v385_v28 = vadd.f32 %v2067_v31, %v2065_v9  ;;  %v1472_v44 = vpop.eup %1471  ;;  %v906_v22 = vmul.f32 0.5513289, %v1949_v48 }
 0x107   : > { %v907_v26 = vmul.f32 0.5513289, %v1951_v60  ;;  %v376_v27 = vrot.slane %v375_v14, 1  ;;  %v381_v32 = vrot.slane %v380_v15, 2  ;;  %v908_v35 = vmul.f32 0.5513289, %v1960_v7 }
 0x108   : > { %v1474_v62 = vpop.eup %1473  ;;  %1489 = vrcp.f32 %v363_v19  ;;  %v386_v34 = vrot.slane %v385_v28, 4  ;;  %v307_v36 = vrot.slane %v306_v37, 1  ;;  %v2081_v16 = vmul.f32 1e-05, %v1935_v45 }
 0x109   : > { %v2078_v53 = vpop.eup %1475  ;;  %v377_v42 = vadd.f32 %v376_v27, %v375_v14  ;;  %v382_v0 = vadd.f32 %v381_v32, %v380_v15  ;;  %v836_v20 = vsub.f32 1.0, %v2069_v18  ;;  %v2087_v60 = vmul.f32 1e-05, %v1943_v52  ;;  %v1537_v32 = vld [vmem:[%s1786_s11 + $0x10] sm:$0xff] }
 0x10a   : > { %v2084_v48 = vpop.eup %1477  ;;  %v909_v30 = vmul.f32 0.5513289, %v885_v13  ;;  %v387_v55 = vadd.f32 %v386_v34, %v385_v28  ;;  %v837_v7 = vsub.f32 1.0, %v2073_v5  ;;  %v2090_v49 = vmul.f32 1e-05, %v906_v22 }
 0x10b   : > { %1491 = vrcp.f32 %v377_v42  ;;  %v383_v54 = vrot.slane %v382_v0, 1  ;;  %v887_v45 = vmul.f32 0.6931472, %v1992_v11  ;;  %v2093_v58 = vmul.f32 1e-05, %v907_v26 }
 0x10c   : > { %v1480_v17 = vpop.eup %1479  ;;  %v2095_v12 = vmul.f32 1e-05, %v908_v35  ;;  %v388_v41 = vrot.slane %v387_v55, 2  ;;  %v308_v8 = vmax.f32 %v306_v37, %v307_v36  ;;  %v392_v10 = vadd.f32 %v2084_v48, %v2078_v53 }
 0x10d   : > { %v2097_v3 = vpop.eup %1481  ;;  %v384_v52 = vadd.f32 %v383_v54, %v382_v0  ;;  %v861_v23 = vmul.f32 %v1472_v44, %v2018_v61  ;;  %1493 = vrcp.f32 %v836_v20  ;;  %v2104_v21 = vmul.f32 1e-05, %v909_v30  ;;  %v1539_v20 = vld [vmem:[%s1786_s11] sm:$0xff] }
 0x10e   : > { %v2102_v1 = vpop.eup %1483  ;;  %v389_v11 = vadd.f32 %v388_v41, %v387_v55  ;;  %v863_v2 = vmul.f32 %v1474_v62, %v2020_v38  ;;  %1495 = vrcp.f32 %v837_v7  ;;  %v889_v4 = vmul.f32 0.6931472, %v2002_v25 }
 0x10f   : > { %v1486_v13 = vpop.eup %1485  ;;  %1497 = vrcp.f32 %v384_v52  ;;  %v910_v40 = vmul.f32 0.5513289, %v887_v45  ;;  %v399_v50 = vadd.f32 %v2102_v1, %v2097_v3  ;;  %v891_v14 = vmul.f32 0.6931472, %v1480_v17 }
 0x110   : > { %v1488_v37 = vpop.eup %1487  ;;  %v390_v61 = vrot.slane %v389_v11, 1  ;;  %v323_v15 = vsub.f32 %v2014_v57, %v308_v8  ;;  %v324_v19 = vsub.f32 %v2008_v47, %v308_v8  ;;  %v393_v44 = vrot.slane %v392_v10, 4  ;;  %v1538_v57 = vld [vmem:[%s1786_s11 + $0x18] sm:$0xff] }
 0x111   : > { %v417_v38 = vmul.f32 %v1488_v37, %v2022_v63  ;;  %v418_v28 = vmul.f32 %v1488_v37, %v2026_v29  ;;  %1499 = vlog2.f32 %v861_v23  ;;  %v400_v26 = vrot.slane %v399_v50, 4 }
 0x112   : > { %v1490_v25 = vpop.eup %1489  ;;  %v391_v22 = vadd.f32 %v390_v61, %v389_v11  ;;  %v865_v27 = vmul.f32 %v1486_v13, %v2038_v46  ;;  %1501 = vlog2.f32 %v863_v2  ;;  %v911_v29 = vmul.f32 0.5513289, %v889_v4 }
 0x113   : > { %v2116_v62 = vmul.f32 %v1537_v32, %v417_v38  ;;  %v2119_v35 = vmul.f32 %v1538_v57, %v418_v28  ;;  %v414_v47 = vmul.f32 %v1490_v25, %v2032_v6  ;;  %v415_v63 = vmul.f32 %v1490_v25, %v2036_v39  ;;  %v1540_v39 = vld [vmem:[%s1786_s11 + $0x8] sm:$0xff] }
 0x114   : > { %1503 = vrcp.f32 %v391_v22  ;;  %v353_v34 = vmul.f32 1.442695, %v323_v15  ;;  %v355_v36 = vmul.f32 1.442695, %v324_v19  ;;  %v394_v6 = vadd.f32 %v393_v44, %v392_v10  ;;  %v1541_v10 = vld [vmem:[%s1786_s11 + $0x20] sm:$0xff] }
 0x115   : > { %v1492_v42 = vpop.eup %1491  ;;  %v2125_v46 = vadd.f32 %v1933_v43, %v2116_v62  ;;  %v2129_v0 = vadd.f32 %v1941_v51, %v2119_v35  ;;  %v2132_v30 = vmul.f32 %v1539_v20, %v414_v47  ;;  %v2135_v55 = vmul.f32 %v1540_v39, %v415_v63 }
 0x116   : > { %v420_v7 = vmul.f32 %v1492_v42, %v2045_v24  ;;  %v421_v54 = vmul.f32 %v1492_v42, %v2049_v33  ;;  %v401_v45 = vadd.f32 %v400_v26, %v399_v50  ;;  %v912_v41 = vmul.f32 0.5513289, %v891_v14  ;;  %v1542_v33 = vld [vmem:[%s1786_s11 + $0x28] sm:$0xff]  ;;  %v1543_v26 = vld [vmem:[%s1786_s11 + $0x30] sm:$0xff] }
 0x117   : > { %v1494_v43 = vpop.eup %1493  ;;  %v957_v17 = vadd.f32 %v2129_v0, %v2125_v46  ;;  %v2143_v51 = vadd.f32 %v2081_v16, %v2132_v30  ;;  %1505 = vlog2.f32 %v865_v27  ;;  %v2147_v52 = vadd.f32 %v2087_v60, %v2135_v55 }
 0x118   : > { %v1496_v8 = vpop.eup %1495  ;;  %v2150_v24 = vmul.f32 %v1541_v10, %v420_v7  ;;  %v2153_v23 = vmul.f32 %v1542_v33, %v421_v54  ;;  %1507 = vpow2.f32 %v353_v34  ;;  %v926_v13 = vmul.f32 1e-05, %v910_v40  ;;  %v1545_v54 = vld [vmem:[%s1786_s11 + $0x40] sm:$0xff] }
 0x119   : > { %v1498_v11 = vpop.eup %1497  ;;  %v958_v2 = vrot.slane %v957_v17, 4  ;;  %v395_v4 = vrot.slane %v394_v6, 2  ;;  %1509 = vpow2.f32 %v355_v36  ;;  %v950_v16 = vadd.f32 %v2147_v52, %v2143_v51 }
 0x11a   : > { %v2159_v60 = vadd.f32 %v2090_v49, %v2150_v24  ;;  %v402_v50 = vrot.slane %v401_v45, 2  ;;  %v867_v37 = vmul.f32 %v1494_v43, %v2069_v18  ;;  %v2164_v15 = vadd.f32 %v2093_v58, %v2153_v23 }
 0x11b   : > { %v1500_v61 = vpop.eup %1499  ;;  %v959_v14 = vadd.f32 %v958_v2, %v957_v17  ;;  %v423_v40 = vmul.f32 %v1498_v11, %v2054_v59  ;;  %v927_v19 = vmul.f32 1e-05, %v911_v29  ;;  %v951_v28 = vrot.slane %v950_v16, 4  ;;  %v1544_v59 = vld [vmem:[%s1786_s11 + $0x38] sm:$0xff] }
 0x11c   : > { %v1502_v38 = vpop.eup %1501  ;;  %v424_v44 = vmul.f32 %v1498_v11, %v2058_v56  ;;  %v2168_v25 = vmul.f32 1e-05, %v912_v41  ;;  %v869_v49 = vmul.f32 %v1496_v8, %v2073_v5  ;;  %v964_v18 = vadd.f32 %v2164_v15, %v2159_v60  ;;  %v1546_v41 = vld [vmem:[%s1786_s11 + $0x48] sm:$0xff] }
 0x11d   : > { %v960_v22 = vrot.slane %v959_v14, 2  ;;  %v2174_v27 = vmul.f32 %v1543_v26, %v423_v40  ;;  %v396_v58 = vadd.f32 %v395_v4, %v394_v6  ;;  %v952_v57 = vadd.f32 %v951_v28, %v950_v16 }
 0x11e   : > { %v1504_v32 = vpop.eup %1503  ;;  %v2177_v47 = vmul.f32 %v1544_v59, %v424_v44  ;;  %v403_v63 = vadd.f32 %v402_v50, %v401_v45  ;;  %1511 = vlog2.f32 %v867_v37  ;;  %v965_v29 = vrot.slane %v964_v18, 4 }
 0x11f   : > { %v961_v56 = vadd.f32 %v960_v22, %v959_v14  ;;  %v2181_v5 = vadd.f32 %v2095_v12, %v2174_v27  ;;  %v426_v34 = vmul.f32 %v1504_v32, %v2065_v9  ;;  %v953_v36 = vrot.slane %v952_v57, 2 }
 0x120   : > { %v2186_v42 = vadd.f32 %v2104_v21, %v2177_v47  ;;  %v427_v20 = vmul.f32 %v1504_v32, %v2067_v31  ;;  %1513 = vlog2.f32 %v869_v49  ;;  %v966_v7 = vadd.f32 %v965_v29, %v964_v18 }
 0x121   : > { %v1506_v6 = vpop.eup %1505  ;;  %v962_v39 = vrot.slane %v961_v56, 1  ;;  %v2190_v45 = vmul.f32 %v1545_v54, %v426_v34  ;;  %v397_v43 = vrot.slane %v396_v58, 1  ;;  %v954_v12 = vadd.f32 %v953_v36, %v952_v57 }
 0x122   : > { %v2192_v17 = vpop.eup %1507  ;;  %v971_v9 = vadd.f32 %v2186_v42, %v2181_v5  ;;  %v2197_v8 = vmul.f32 %v1546_v41, %v427_v20  ;;  %v893_v21 = vmul.f32 0.6931472, %v1500_v61  ;;  %v967_v33 = vrot.slane %v966_v7, 2 }
 0x123   : > { %v2199_v10 = vpop.eup %1509  ;;  %v963_v31 = vadd.f32 %v962_v39, %v961_v56  ;;  %v2202_v11 = vadd.f32 %v926_v13, %v2190_v45  ;;  %v404_v2 = vrot.slane %v403_v63, 1  ;;  %v955_v4 = vrot.slane %v954_v12, 1 }
 0x124   : > { %v972_v16 = vrot.slane %v971_v9, 4  ;;  %v2205_v50 = vadd.f32 %v927_v19, %v2197_v8  ;;  %v895_v37 = vmul.f32 0.6931472, %v1502_v38  ;;  %v968_v40 = vadd.f32 %v967_v33, %v966_v7 }
 0x125   : > { %v1008_v14 = vmul.f32 0.0625, %v963_v31  ;;  %v398_v28 = vadd.f32 %v397_v43, %v396_v58  ;;  %v897_v44 = vmul.f32 0.6931472, %v1506_v6  ;;  %v956_v49 = vadd.f32 %v955_v4, %v954_v12 }
 0x126   : > { %v973_v61 = vadd.f32 %v972_v16, %v971_v9  ;;  %v978_v22 = vadd.f32 %v2205_v50, %v2202_v11  ;;  %v406_v13 = vadd.f32 %v2199_v10, %v2192_v17  ;;  %v969_v32 = vrot.slane %v968_v40, 1 }
 0x127   : > { %v1017_v18 = vsub.f32 %v2125_v46, %v1008_v14  ;;  %v1018_v26 = vsub.f32 %v2129_v0, %v1008_v14  ;;  %v405_v19 = vadd.f32 %v404_v2, %v403_v63  ;;  %v1007_v38 = vmul.f32 0.0625, %v956_v49 }
 0x128   : > { %v1512_v57 = vpop.eup %1511  ;;  %v974_v59 = vrot.slane %v973_v61, 2  ;;  %v979_v56 = vrot.slane %v978_v22, 4  ;;  %v407_v58 = vrot.slane %v406_v13, 4  ;;  %v970_v36 = vadd.f32 %v969_v32, %v968_v40 }
 0x129   : > { %v1033_v29 = vmul.f32 %v1017_v18, %v1017_v18  ;;  %v1034_v34 = vmul.f32 %v1018_v26, %v1018_v26  ;;  %1515 = vrcp.f32 %v398_v28  ;;  %v1015_v6 = vsub.f32 %v2143_v51, %v1007_v38 }
 0x12a   : > { %v1514_v20 = vpop.eup %1513  ;;  %v1016_v39 = vsub.f32 %v2147_v52, %v1007_v38  ;;  %v975_v7 = vadd.f32 %v974_v59, %v973_v61  ;;  %v980_v46 = vadd.f32 %v979_v56, %v978_v22  ;;  %v1009_v0 = vmul.f32 0.0625, %v970_v36 }
 0x12b   : > { %v1054_v54 = vadd.f32 %v1034_v34, %v1033_v29  ;;  %1517 = vrcp.f32 %v405_v19  ;;  %v408_v63 = vadd.f32 %v407_v58, %v406_v13  ;;  %v1031_v43 = vmul.f32 %v1015_v6, %v1015_v6 }
 0x12c   : > { %v1032_v12 = vmul.f32 %v1016_v39, %v1016_v39  ;;  %v976_v9 = vrot.slane %v975_v7, 1  ;;  %v981_v41 = vrot.slane %v980_v46, 2  ;;  %v1019_v33 = vsub.f32 %v2159_v60, %v1009_v0 }
 0x12d   : > { %v1055_v31 = vrot.slane %v1054_v54, 4  ;;  %v1020_v2 = vsub.f32 %v2164_v15, %v1009_v0  ;;  %v409_v4 = vrot.slane %v408_v63, 2  ;;  %v899_v14 = vmul.f32 0.6931472, %v1512_v57 }
 0x12e   : > { %v977_v16 = vadd.f32 %v976_v9, %v975_v7  ;;  %v982_v51 = vadd.f32 %v981_v41, %v980_v46  ;;  %v913_v52 = vmul.f32 0.5513289, %v893_v21  ;;  %v453_v28 = vadd.f32 %v2135_v55, %v2132_v30 }
 0x12f   : > { %v1056_v40 = vadd.f32 %v1055_v31, %v1054_v54  ;;  %v1047_v49 = vadd.f32 %v1032_v12, %v1031_v43  ;;  %v410_v61 = vadd.f32 %v409_v4, %v408_v63  ;;  %v1035_v22 = vmul.f32 %v1019_v33, %v1019_v33 }
 0x130   : > { %v1036_v13 = vmul.f32 %v1020_v2, %v1020_v2  ;;  %v1010_v18 = vmul.f32 0.0625, %v977_v16  ;;  %v983_v26 = vrot.slane %v982_v51, 1  ;;  %v901_v19 = vmul.f32 0.6931472, %v1514_v20 }
 0x131   : > { %v411_v32 = vrot.slane %v410_v61, 1  ;;  %v914_v60 = vmul.f32 0.5513289, %v895_v37  ;;  %v460_v15 = vadd.f32 %v2119_v35, %v2116_v62  ;;  %v1057_v56 = vrot.slane %v1056_v40, 2 }
 0x132   : > { %v1021_v38 = vsub.f32 %v2181_v5, %v1010_v18  ;;  %v1022_v21 = vsub.f32 %v2186_v42, %v1010_v18  ;;  %v984_v57 = vadd.f32 %v983_v26, %v982_v51  ;;  %v454_v30 = vrot.slane %v453_v28, 4  ;;  %v1549_v26 = vld [vmem:[%s1786_s11 + $0x60] sm:$0xff] }
 0x133   : > { %v1516_v59 = vpop.eup %1515  ;;  %v1048_v55 = vrot.slane %v1047_v49, 4  ;;  %v412_v58 = vadd.f32 %v411_v32, %v410_v61  ;;  %v1061_v29 = vadd.f32 %v1036_v13, %v1035_v22  ;;  %v915_v36 = vmul.f32 0.5513289, %v897_v44 }
 0x134   : > { %v1011_v34 = vmul.f32 0.0625, %v984_v57  ;;  %v2223_v6 = vmul.f32 1e-05, %v913_v52  ;;  %v1037_v37 = vmul.f32 %v1021_v38, %v1021_v38  ;;  %v1038_v39 = vmul.f32 %v1022_v21, %v1022_v21  ;;  %v1547_v52 = vld [vmem:[%s1786_s11 + $0x50] sm:$0xff] }
 0x135   : > { %v1518_v20 = vpop.eup %1517  ;;  %1519 = vrcp.f32 %v412_v58  ;;  %v916_v62 = vmul.f32 0.5513289, %v899_v14  ;;  %v461_v35 = vrot.slane %v460_v15, 4  ;;  %v467_v5 = vadd.f32 %v2153_v23, %v2150_v24 }
 0x136   : > { %v1023_v42 = vsub.f32 %v2202_v11, %v1011_v34  ;;  %v1024_v7 = vsub.f32 %v2205_v50, %v1011_v34  ;;  %v1058_v46 = vadd.f32 %v1057_v56, %v1056_v40  ;;  %v455_v54 = vadd.f32 %v454_v30, %v453_v28  ;;  %v1548_v40 = vld [vmem:[%s1786_s11 + $0x58] sm:$0xff]  ;;  %v1551_v34 = vld [vmem:[%s1786_s11 + $0x70] sm:$0xff] }
 0x137   : > { %v1049_v0 = vadd.f32 %v1048_v55, %v1047_v49  ;;  %v429_v44 = vmul.f32 %v1516_v59, %v2078_v53  ;;  %v1062_v63 = vrot.slane %v1061_v29, 4  ;;  %v430_v9 = vmul.f32 %v1516_v59, %v2084_v48 }
 0x138   : > { %v1039_v43 = vmul.f32 %v1023_v42, %v1023_v42  ;;  %v1040_v12 = vmul.f32 %v1024_v7, %v1024_v7  ;;  %v1068_v41 = vadd.f32 %v1038_v39, %v1037_v37  ;;  %v917_v31 = vmul.f32 0.5513289, %v901_v19  ;;  %v1550_v19 = vld [vmem:[%s1786_s11 + $0x68] sm:$0xff] }
 0x139   : > { %v930_v33 = vmul.f32 1e-05, %v914_v60  ;;  %v931_v24 = vmul.f32 1e-05, %v915_v36  ;;  %v462_v23 = vadd.f32 %v461_v35, %v460_v15  ;;  %v432_v50 = vmul.f32 %v1518_v20, %v2097_v3 }
 0x13a   : > { %v1075_v11 = vadd.f32 %v1040_v12, %v1039_v43  ;;  %v433_v2 = vmul.f32 %v1518_v20, %v2102_v1  ;;  %v1059_v4 = vrot.slane %v1058_v46, 1  ;;  %v456_v53 = vrot.slane %v455_v54, 2  ;;  %v1552_v20 = vld [vmem:[%s1786_s11 + $0x78] sm:$0xff] }
 0x13b   : > { %v1050_v16 = vrot.slane %v1049_v0, 2  ;;  %v468_v51 = vrot.slane %v467_v5, 4  ;;  %v1063_v14 = vadd.f32 %v1062_v63, %v1061_v29  ;;  %v447_v48 = vmul.f32 %v1547_v52, %v429_v44 }
 0x13c   : > { %v448_v28 = vmul.f32 %v1548_v40, %v430_v9  ;;  %v932_v49 = vmul.f32 1e-05, %v916_v62  ;;  %v474_v61 = vadd.f32 %v2177_v47, %v2174_v27  ;;  %v1069_v22 = vrot.slane %v1068_v41, 4 }
 0x13d   : > { %v481_v3 = vadd.f32 %v2197_v8, %v2190_v45  ;;  %v933_v1 = vmul.f32 1e-05, %v917_v31  ;;  %v463_v13 = vrot.slane %v462_v23, 2  ;;  %v1076_v18 = vrot.slane %v1075_v11, 4 }
 0x13e   : > { %v449_v32 = vmul.f32 %v1549_v26, %v432_v50  ;;  %v450_v60 = vmul.f32 %v1550_v19, %v433_v2  ;;  %v1060_v38 = vadd.f32 %v1059_v4, %v1058_v46  ;;  %v1051_v21 = vadd.f32 %v1050_v16, %v1049_v0 }
 0x13f   : > { %v1520_v15 = vpop.eup %1519  ;;  %v469_v57 = vadd.f32 %v468_v51, %v467_v5  ;;  %v457_v59 = vadd.f32 %v456_v53, %v455_v54  ;;  %v1064_v56 = vrot.slane %v1063_v14, 2  ;;  %v488_v45 = vadd.f32 %v448_v28, %v447_v48 }
 0x140   : > { %v435_v27 = vmul.f32 %v1520_v15, %v2192_v17  ;;  %v436_v47 = vmul.f32 %v1520_v15, %v2199_v10  ;;  %v475_v8 = vrot.slane %v474_v61, 4  ;;  %v1070_v30 = vadd.f32 %v1069_v22, %v1068_v41 }
 0x141   : > { %v2244_v55 = vadd.f32 %v2168_v25, %v447_v48  ;;  %v482_v58 = vrot.slane %v481_v3, 4  ;;  %v1077_v29 = vadd.f32 %v1076_v18, %v1075_v11  ;;  %v495_v39 = vadd.f32 %v450_v60, %v449_v32 }
 0x142   : > { %v451_v36 = vmul.f32 %v1551_v34, %v435_v27  ;;  %v452_v37 = vmul.f32 %v1552_v20, %v436_v47  ;;  %v2248_v62 = vmul.f32 0.06666667, %v1060_v38  ;;  %v1052_v35 = vrot.slane %v1051_v21, 1 }
 0x143   : > { %v458_v5 = vrot.slane %v457_v59, 1  ;;  %v464_v17 = vadd.f32 %v463_v13, %v462_v23  ;;  %v1065_v42 = vadd.f32 %v1064_v56, %v1063_v14  ;;  %v489_v10 = vrot.slane %v488_v45, 4 }
 0x144   : > { %v502_v7 = vadd.f32 %v452_v37, %v451_v36  ;;  %v2251_v46 = vadd.f32 %v2223_v6, %v448_v28  ;;  %v1071_v25 = vrot.slane %v1070_v30, 2  ;;  %v476_v54 = vadd.f32 %v475_v8, %v474_v61 }
 0x145   : > { %v483_v0 = vadd.f32 %v482_v58, %v481_v3  ;;  %v2253_v44 = vadd.f32 %v930_v33, %v449_v32  ;;  %v1078_v63 = vrot.slane %v1077_v29, 2  ;;  %v496_v43 = vrot.slane %v495_v39, 4 }
 0x146   : > { %v2255_v12 = vadd.f32 %v931_v24, %v450_v60  ;;  %v2257_v9 = vadd.f32 %v932_v49, %v451_v36  ;;  %v2259_v41 = vadd.f32 %v458_v5, %v457_v59  ;;  %v465_v31 = vrot.slane %v464_v17, 1 }
 0x147   : > { %v2261_v23 = vadd.f32 %v933_v1, %v452_v37  ;;  %v985_v6 = vadd.f32 %v2251_v46, %v2244_v55  ;;  %v470_v11 = vrot.slane %v469_v57, 2  ;;  %v490_v50 = vadd.f32 %v489_v10, %v488_v45 }
 0x148   : > { %v503_v2 = vrot.slane %v502_v7, 4  ;;  %v992_v33 = vadd.f32 %v2255_v12, %v2253_v44  ;;  %v1072_v4 = vadd.f32 %v1071_v25, %v1070_v30  ;;  %v477_v53 = vrot.slane %v476_v54, 2 }
 0x149   : > { %v986_v24 = vrot.slane %v985_v6, 4  ;;  %v999_v16 = vadd.f32 %v2261_v23, %v2257_v9  ;;  %v1079_v51 = vadd.f32 %v1078_v63, %v1077_v29  ;;  %v484_v14 = vrot.slane %v483_v0, 2 }
 0x14a   : > { %v497_v52 = vadd.f32 %v496_v43, %v495_v39  ;;  %v993_v48 = vrot.slane %v992_v33, 4  ;;  %v1053_v40 = vadd.f32 %v1052_v35, %v1051_v21  ;;  %v1066_v28 = vrot.slane %v1065_v42, 1 }
 0x14b   : > { %v987_v49 = vadd.f32 %v986_v24, %v985_v6  ;;  %v1000_v61 = vrot.slane %v999_v16, 4  ;;  %v471_v22 = vadd.f32 %v470_v11, %v469_v57  ;;  %v491_v3 = vrot.slane %v490_v50, 2 }
 0x14c   : > { %v504_v1 = vadd.f32 %v503_v2, %v502_v7  ;;  %v994_v13 = vadd.f32 %v993_v48, %v992_v33  ;;  %v1073_v18 = vrot.slane %v1072_v4, 1  ;;  %v478_v26 = vadd.f32 %v477_v53, %v476_v54 }
 0x14d   : > { %v988_v32 = vrot.slane %v987_v49, 2  ;;  %v1001_v19 = vadd.f32 %v1000_v61, %v999_v16  ;;  %v1080_v60 = vrot.slane %v1079_v51, 1  ;;  %v485_v15 = vadd.f32 %v484_v14, %v483_v0 }
 0x14e   : > { %v498_v38 = vrot.slane %v497_v52, 2  ;;  %v995_v59 = vrot.slane %v994_v13, 2  ;;  %v1067_v56 = vadd.f32 %v1066_v28, %v1065_v42  ;;  %v466_v27 = vadd.f32 %v465_v31, %v464_v17 }
 0x14f   : > { %v989_v47 = vadd.f32 %v988_v32, %v987_v49  ;;  %v1002_v45 = vrot.slane %v1001_v19, 2  ;;  %v472_v21 = vrot.slane %v471_v22, 1  ;;  %v492_v8 = vadd.f32 %v491_v3, %v490_v50 }
 0x150   : > { %v505_v30 = vrot.slane %v504_v1, 2  ;;  %v996_v57 = vadd.f32 %v995_v59, %v994_v13  ;;  %v1074_v58 = vadd.f32 %v1073_v18, %v1072_v4  ;;  %v479_v29 = vrot.slane %v478_v26, 1 }
 0x151   : > { %v990_v34 = vrot.slane %v989_v47, 1  ;;  %v1003_v36 = vadd.f32 %v1002_v45, %v1001_v19  ;;  %v1081_v20 = vadd.f32 %v1080_v60, %v1079_v51  ;;  %v486_v37 = vrot.slane %v485_v15, 1 }
 0x152   : > { %v499_v39 = vadd.f32 %v498_v38, %v497_v52  ;;  %v997_v35 = vrot.slane %v996_v57, 1  ;;  %v2269_v5 = vmul.f32 0.06666667, %v1053_v40  ;;  %v2271_v17 = vmul.f32 0.06666667, %v1067_v56 }
 0x153   : > { %v991_v42 = vadd.f32 %v990_v34, %v989_v47  ;;  %v1004_v10 = vrot.slane %v1003_v36, 1  ;;  %v473_v7 = vadd.f32 %v472_v21, %v471_v22  ;;  %v493_v25 = vrot.slane %v492_v8, 1 }
 0x154   : > { %v506_v54 = vadd.f32 %v505_v30, %v504_v1  ;;  %v998_v0 = vadd.f32 %v997_v35, %v996_v57  ;;  %v2273_v63 = vmul.f32 0.06666667, %v1074_v58  ;;  %v480_v43 = vadd.f32 %v479_v29, %v478_v26 }
 0x155   : > { %v1005_v31 = vadd.f32 %v1004_v10, %v1003_v36  ;;  %v1012_v6 = vmul.f32 0.0625, %v991_v42  ;;  %v2275_v11 = vmul.f32 0.06666667, %v1081_v20  ;;  %v487_v50 = vadd.f32 %v486_v37, %v485_v15 }
 0x156   : > { %v500_v2 = vrot.slane %v499_v39, 1  ;;  %v1013_v33 = vmul.f32 0.0625, %v998_v0  ;;  %1521 = vrsqrt.f32 %v2269_v5  ;;  %v494_v16 = vadd.f32 %v493_v25, %v492_v8 }
 0x157   : > { %v1014_v4 = vmul.f32 0.0625, %v1005_v31  ;;  %v1025_v53 = vsub.f32 %v2244_v55, %v1012_v6  ;;  %v1026_v24 = vsub.f32 %v2251_v46, %v1012_v6  ;;  %v507_v51 = vrot.slane %v506_v54, 1 }
 0x158   : > { %v1027_v14 = vsub.f32 %v2253_v44, %v1013_v33  ;;  %v1028_v52 = vsub.f32 %v2255_v12, %v1013_v33  ;;  %v501_v61 = vadd.f32 %v500_v2, %v499_v39  ;;  %v1176_v55 = vsel %vm1175_vm0, %v466_v27, %v2259_v41 }
 0x159   : > { %v1029_v48 = vsub.f32 %v2257_v9, %v1014_v4  ;;  %v1030_v40 = vsub.f32 %v2261_v23, %v1014_v4  ;;  %v1041_v28 = vmul.f32 %v1025_v53, %v1025_v53  ;;  %v1042_v49 = vmul.f32 %v1026_v24, %v1026_v24 }
 0x15a   : > { %v1043_v22 = vmul.f32 %v1027_v14, %v1027_v14  ;;  %v1044_v3 = vmul.f32 %v1028_v52, %v1028_v52  ;;  %v1178_v44 = vsel %vm1177_vm1, %v473_v7, %v1176_v55  ;;  %v508_v18 = vadd.f32 %v507_v51, %v506_v54 }
 0x15b   : > { %v1045_v46 = vmul.f32 %v1029_v48, %v1029_v48  ;;  %v1046_v1 = vmul.f32 %v1030_v40, %v1030_v40  ;;  %v1082_v13 = vadd.f32 %v1042_v49, %v1041_v28  ;;  %1523 = vrsqrt.f32 %v2248_v62 }
 0x15c   : > { %v1089_v12 = vadd.f32 %v1044_v3, %v1043_v22  ;;  %v1180_v9 = vsel %vm1179_vm2, %v480_v43, %v1178_v44  ;;  %1525 = vrsqrt.f32 %v2271_v17  ;;  %vm1113_vm7 = vcmp.eq.f32.partialorder %v2269_v5, inf }
 0x15d   : > { %v1083_v23 = vrot.slane %v1082_v13, 4  ;;  %v1096_v26 = vadd.f32 %v1046_v1, %v1045_v46  ;;  %v1182_v32 = vsel %vm1181_vm3, %v487_v50, %v1180_v9  ;;  %1527 = vrsqrt.f32 %v2273_v63 }
 0x15e   : > { %v1090_v19 = vrot.slane %v1089_v12, 4  ;;  %v1184_v41 = vsel %vm1183_vm4, %v494_v16, %v1182_v32  ;;  %1529 = vrsqrt.f32 %v2275_v11  ;;  %vm1115_vm8 = vcmp.eq.f32.partialorder %v2269_v5, 0.0 }
 0x15f   : > { %v1084_v60 = vadd.f32 %v1083_v23, %v1082_v13  ;;  %v1097_v15 = vrot.slane %v1096_v26, 4  ;;  %v1186_v38 = vsel %vm1185_vm5, %v501_v61, %v1184_v41  ;;  %v1116_v2 = vand.u32 2147483648, %v2269_v5 }
 0x160   : > { %v1091_v59 = vadd.f32 %v1090_v19, %v1089_v12  ;;  %v1188_v56 = vsel %vm1187_vm6, %v508_v18, %v1186_v38  ;;  %v1522_v27 = vpop.eup %1521  ;;  %vm1120_vm9 = vcmp.eq.f32.partialorder %v2248_v62, inf  ;;  %vm1127_vm10 = vcmp.eq.f32.partialorder %v2271_v17, inf }
 0x161   : > { %v1085_v47 = vrot.slane %v1084_v60, 2  ;;  %v1098_v45 = vadd.f32 %v1097_v15, %v1096_v26  ;;  %1190 = vst [vmem:[%s2297_s13] sm:$0xff] %v1188_v56  ;;  %v1112_v54 = vmul.f32 %v1522_v27, %v2269_v5  ;;  %vm1122_vm11 = vcmp.eq.f32.partialorder %v2248_v62, 0.0 }
 0x162   : > { %v1092_v21 = vrot.slane %v1091_v59, 2  ;;  %v1123_v24 = vand.u32 2147483648, %v2248_v62  ;;  %vm1134_vm12 = vcmp.eq.f32.partialorder %v2273_v63, inf  ;;  %vm1129_vm13 = vcmp.eq.f32.partialorder %v2271_v17, 0.0 }
 0x163   : > { %v1086_v8 = vadd.f32 %v1085_v47, %v1084_v60  ;;  %v1099_v30 = vrot.slane %v1098_v45, 2  ;;  %v1114_v4 = vsel %vm1113_vm7, %v2269_v5, %v1112_v54  ;;  %v1130_v51 = vand.u32 2147483648, %v2271_v17 }
 0x164   : > { %v1093_v57 = vadd.f32 %v1092_v21, %v1091_v59  ;;  %vm1141_vm14 = vcmp.eq.f32.partialorder %v2275_v11, inf  ;;  %v1117_v52 = vsel %vm1115_vm8, %v1116_v2, %v1114_v4  ;;  %v1137_v40 = vand.u32 2147483648, %v2273_v63 }
 0x165   : > { %v1087_v58 = vrot.slane %v1086_v8, 1  ;;  %v1100_v29 = vadd.f32 %v1099_v30, %v1098_v45  ;;  %v1524_v34 = vpop.eup %1523  ;;  %vm1136_vm15 = vcmp.eq.f32.partialorder %v2273_v63, 0.0  ;;  %v1144_v49 = vand.u32 2147483648, %v2275_v11 }
 0x166   : > { %v1094_v36 = vrot.slane %v1093_v57, 1  ;;  %v1526_v20 = vpop.eup %1525  ;;  %v1119_v0 = vmul.f32 %v1524_v34, %v2248_v62  ;;  %vm1143_vm7 = vcmp.eq.f32.partialorder %v2275_v11, 0.0 }
 0x167   : > { %v1088_v37 = vadd.f32 %v1087_v58, %v1086_v8  ;;  %v1101_v39 = vrot.slane %v1100_v29, 1  ;;  %v1528_v35 = vpop.eup %1527  ;;  %v1126_v31 = vmul.f32 %v1526_v20, %v2271_v17 }
 0x168   : > { %v1095_v42 = vadd.f32 %v1094_v36, %v1093_v57  ;;  %v1530_v10 = vpop.eup %1529  ;;  %v1133_v50 = vmul.f32 %v1528_v35, %v2273_v63  ;;  %v1121_v53 = vsel %vm1120_vm9, %v2248_v62, %v1119_v0 }
 0x169   : > { %v1102_v7 = vadd.f32 %v1101_v39, %v1100_v29  ;;  %v1108_v25 = vmul.f32 0.06666667, %v1088_v37  ;;  %v1140_v33 = vmul.f32 %v1530_v10, %v2275_v11  ;;  %v1128_v16 = vsel %vm1127_vm10, %v2271_v17, %v1126_v31 }
 0x16a   : > { %v1109_v43 = vmul.f32 0.06666667, %v1095_v42  ;;  %v1135_v14 = vsel %vm1134_vm12, %v2273_v63, %v1133_v50  ;;  %v1124_v48 = vsel %vm1122_vm11, %v1123_v24, %v1121_v53  ;;  %v1131_v28 = vsel %vm1129_vm13, %v1130_v51, %v1128_v16 }
 0x16b   : > { %v1110_v6 = vmul.f32 0.06666667, %v1102_v7  ;;  %1531 = vrsqrt.f32 %v1108_v25  ;;  %v1142_v62 = vsel %vm1141_vm14, %v2275_v11, %v1140_v33  ;;  %v1138_v61 = vsel %vm1136_vm15, %v1137_v40, %v1135_v14 }
 0x16c   : > { %1533 = vrsqrt.f32 %v1109_v43  ;;  %v1145_v17 = vsel %vm1143_vm7, %v1144_v49, %v1142_v62  ;;  %v1199_v22 = vsel %vm1175_vm0, %v1124_v48, %v1117_v52  ;;  %vm1148_vm8 = vcmp.eq.f32.partialorder %v1108_v25, inf }
 0x16d   : > { %1535 = vrsqrt.f32 %v1110_v6  ;;  %v1200_v3 = vsel %vm1177_vm1, %v1131_v28, %v1199_v22  ;;  %vm1150_vm9 = vcmp.eq.f32.partialorder %v1108_v25, 0.0  ;;  %v1151_v44 = vand.u32 2147483648, %v1108_v25 }
 0x16e   : > { %v1201_v55 = vsel %vm1179_vm2, %v1138_v61, %v1200_v3  ;;  %vm1155_vm10 = vcmp.eq.f32.partialorder %v1109_v43, inf  ;;  %vm1157_vm11 = vcmp.eq.f32.partialorder %v1109_v43, 0.0  ;;  %v1158_v12 = vand.u32 2147483648, %v1109_v43 }
 0x16f   : > { %v1202_v63 = vsel %vm1181_vm3, %v1145_v17, %v1201_v55  ;;  %vm1162_vm0 = vcmp.eq.f32.partialorder %v1110_v6, inf  ;;  %v1165_v32 = vand.u32 2147483648, %v1110_v6  ;;  %vm1164_vm1 = vcmp.eq.f32.partialorder %v1110_v6, 0.0 }
 0x175   : > { %v1532_v5 = vpop.eup %1531 }
 0x176   : > { %v1534_v46 = vpop.eup %1533  ;;  %v1147_v1 = vmul.f32 %v1532_v5, %v1108_v25 }
 0x177   : > { %v1536_v13 = vpop.eup %1535  ;;  %v1154_v18 = vmul.f32 %v1534_v46, %v1109_v43 }
 0x178   : > { %v1149_v11 = vsel %vm1148_vm8, %v1108_v25, %v1147_v1  ;;  %v1161_v9 = vmul.f32 %v1536_v13, %v1110_v6 }
 0x179   : > { %v1152_v23 = vsel %vm1150_vm9, %v1151_v44, %v1149_v11  ;;  %v1156_v26 = vsel %vm1155_vm10, %v1109_v43, %v1154_v18 }
 0x17a   : > { %v1159_v19 = vsel %vm1157_vm11, %v1158_v12, %v1156_v26  ;;  %v1163_v41 = vsel %vm1162_vm0, %v1110_v6, %v1161_v9  ;;  %v1203_v60 = vsel %vm1183_vm4, %v1152_v23, %v1202_v63 }
 0x17b   : > { %v1166_v15 = vsel %vm1164_vm1, %v1165_v32, %v1163_v41  ;;  %v1204_v38 = vsel %vm1185_vm5, %v1159_v19, %v1203_v60 }
 0x17c   : > { %v1205_v59 = vsel %vm1187_vm6, %v1166_v15, %v1204_v38 }
 0x17d   : > { %1207 = vst [vmem:[%s2297_s13 + $0x8] sm:$0xff] %v1205_v59 }
 0x17e   : > { %1596 = shalt.err (!%p1593_p2)
}
 0x17f   : > { %s1597_s4 = scalar_lea.hbm %s2338_s27, 256  ;;  %s1601_s5 = scalar_lea.hbm %s2387_s3, 512 }
 0x180   : > { %p1598_p4 = scmp.ne.s32.totalorder %s2338_s27, %s1597_s4  ;;  %p1602_p9 = scmp.lt.u32.totalorder %s2338_s27, %s2387_s3 }
 0x181   : > { %p1603_p1 = scmp.lt.u32.totalorder %s1601_s5, %s1597_s4  ;;  %p1605_p6 = scmp.lt.u32.totalorder %s1597_s4, %s2338_s27 }
 0x182   : > { %p1599_p5 = pnand %p1598_p4, %p2394_p11 }
 0x183   : > { %p1604_p3 = por %p1603_p1, %p1602_p9 }
 0x184   : > { %p1600_p7 = pneg %p1599_p5 }
 0x185   : > { %p1606_p12 = por %p1605_p6, %p1604_p3 }
 0x187   : > { %p1607_p13 = pnand %p1606_p12, %p1600_p7 }
 0x189   : > { %1610 = shalt.err (!%p1607_p13)
}
 0x18a   : > { %1331 = dma.vmem_to_hbm [thread:$0]  (%p2394_p11), %s2340_s20, 256, %s2338_s27, %s1209_s0  }
 0x18b PF: > { %s1235_s8 = sand.u32 1, %s1637_s14   ;;  %p2395_p8 = scmp.ne.s32.totalorder %s2392_s26, 0 }
 0x18c   : > { %p2396_p10 = scmp.ge.s32.totalorder %s1649_s17, 2  ;;  %s1236_s9 = scalar_lea.sflag [#allocation6], %s1235_s8 }
 0x18e   : > { %p1338_p0 = pnand %p2396_p10, %p2395_p8 }
 0x190   : > { %1632 = dma.done.wait (!%p1338_p0), %s1236_s9, 256  }
 0x191   : > { %1634 = vsyncadd (!%p1338_p0), %s1236_s9, 4294967040  ;;  %p17_p2 = scmp.ge.s32.totalorder %s1703_s19, 4   ;;  %s2397_s14 = smov %s1641_s15 }
 0x192   : > { %s2398_s15 = smov %s1645_s16  ;;  %s2399_s16 = smov %s1715_s22 }
 0x193   : > { %s2400_s17 = smov %s1703_s19  ;;  %19 = sbr.rel (!%p17_p2) target bundleno = 7 (0x7), region = 73 }
 0x19a   :  { %1241 = vsyncpa [#allocation5], 1 }
 0x19b   :  { %1243 = vsyncpa [#allocation5 + $0x1], 1 }
 0x19c   :  { %1244 = vsyncpa [#allocation6], 1 }
 0x19d   :  { %1246 = vsyncpa [#allocation6 + $0x1], 1 }

</bundles_post_ra>
